<compile_context>
chip_gen: v5e
topology: v5e:2x2
jax: 0.10.0
libtpu: 0.0.40
codegen_flags: <defaults>
</compile_context>

<pallas_src>
import functools

import numpy as np
import jax
import jax.numpy as jnp
from jax import lax
from jax.experimental import pallas as pl
from jax.experimental.pallas import tpu as pltpu


def _ssc_kernel(x_ref, csum_row_ref, csumT_ref, inv_cn2_ref, spk_ref,
                w_ref, b_ref, loss_ref):
    """One speaker tile: TS speakers, R = TS*M utterance rows.

    Output: loss_ref (1, 1, 128) -- the tile's summed per-row CE loss,
    broadcast across 128 lanes (lane-dense unmasked store).
    """
    x = x_ref[...]                       # (R, Dp) f32 rows of this tile
    crow = csum_row_ref[...]             # (R, Dp) f32 own-speaker sums per row
    csumT = csumT_ref[...]               # (Dp, N) bf16 speaker sums (resident)
    inv_cn2 = inv_cn2_ref[...]           # (1, N)  f32 rsqrt(||csum||^2)
    spk = spk_ref[...]                   # (R, 1)  int32 row -> speaker index
    w = w_ref[0, 0]
    b = b_ref[0, 0]

    eps = jnp.float32(1e-6)
    tiny = jnp.float32(1e-30)

    # Row norms (exact f32), computed once and reused by both paths.
    xn = jnp.sum(x * x, axis=1, keepdims=True)                  # (R, 1)

    # ---- own-speaker (leave-one-out) logits: exact f32, full-slab VPU ------
    # d = csum_spk - x = (M-1) * exclusive centroid; the scale cancels in the
    # cosine and den >= 0 by construction.
    d = crow - x                                                 # (R, Dp)
    num = jnp.sum(x * d, axis=1, keepdims=True)                  # (R, 1)
    den = jnp.sum(d * d, axis=1, keepdims=True)                  # (R, 1)
    cos_same = num * lax.rsqrt(jnp.maximum(xn * den, tiny))
    s_same = jnp.maximum(cos_same, eps) * w + b                  # (R, 1)

    # ---- other-speaker logits: one canonical bf16 MXU pass, f32 accum ------
    dots = jnp.dot(x.astype(jnp.bfloat16), csumT,
                   preferred_element_type=jnp.float32)           # (R, N)
    inv_xn = lax.rsqrt(jnp.maximum(xn, tiny))                    # (R, 1)
    s_off = jnp.maximum(dots * inv_cn2 * inv_xn, eps) * w + b    # (R, N)

    # Exclusive logsumexp over the other speakers (own column -> -inf).
    rr, nn = s_off.shape
    col = lax.broadcasted_iota(jnp.int32, (rr, nn), 1)
    s_masked = jnp.where(col == spk, -jnp.inf, s_off)
    m = jnp.max(s_masked, axis=1, keepdims=True)                 # (R, 1)
    lse = m + jnp.log(jnp.sum(jnp.exp(s_masked - m), axis=1, keepdims=True))

    # Per-row cross-entropy vs the own speaker, summed over the tile's rows.
    hi = jnp.maximum(lse, s_same)
    lo = jnp.minimum(lse, s_same)
    row_loss = hi + jnp.log(1.0 + jnp.exp(lo - hi)) - s_same     # (R, 1)
    loss_ref[...] = jnp.broadcast_to(jnp.sum(row_loss), loss_ref.shape)


def _pick_tile_speakers(N, M, max_rows=512):
    """Speaker-tile size TS: divides N, TS*M rows multiple of 8 (BlockSpec
    sublane alignment) and <= max_rows.  Prefers the largest tile that still
    leaves >= 2 grid steps (v7x megacore); otherwise the largest aligned
    tile; otherwise a single full tile (block == full array, no alignment
    constraint)."""
    cands = [ts for ts in range(1, N + 1)
             if N % ts == 0 and (ts * M) % 8 == 0 and ts * M <= max_rows]
    multi = [ts for ts in cands if N // ts >= 2]
    if multi:
        return max(multi)
    if cands:
        return max(cands)
    return N


def stable_supcont_loss(dvecs, w, b):
    """Forward pass of StableSupContLoss for dvecs (N, M, D); w, b scalars."""
    N, M, D = dvecs.shape
    x3 = dvecs.astype(jnp.float32)
    # Zero-pad the embedding dim to a lane-dense multiple of 128 (free:
    # padding does not change dot products or norms).
    Dp = ((D + 127) // 128) * 128
    if Dp != D:
        x3 = jnp.pad(x3, ((0, 0), (0, 0), (0, Dp - D)))
    x2d = x3.reshape(N * M, Dp)                       # speaker-major rows

    # Grid-invariant precompute (hoisted out of the kernel body).
    csum = jnp.sum(x3, axis=1)                        # (N, Dp) exact f32 sums
    csum_row = jnp.repeat(csum, M, axis=0)            # (N*M, Dp) per-row sums
    csumT_bf16 = csum.T.astype(jnp.bfloat16)          # (Dp, N) MXU operand
    inv_cn2 = lax.rsqrt(jnp.maximum(jnp.sum(csum * csum, axis=1),
                                    jnp.float32(1e-30))).reshape(1, N)
    spk_col = jnp.repeat(jnp.arange(N, dtype=jnp.int32), M).reshape(N * M, 1)

    TS = _pick_tile_speakers(N, M)
    G = N // TS
    R = TS * M

    w_arr = jnp.asarray(w, jnp.float32).reshape(1, 1)
    b_arr = jnp.asarray(b, jnp.float32).reshape(1, 1)

    partial = pl.pallas_call(
        _ssc_kernel,
        grid=(G,),
        in_specs=[
            pl.BlockSpec((R, Dp), lambda i: (i, 0)),             # x rows of tile i
            pl.BlockSpec((R, Dp), lambda i: (i, 0)),             # own-speaker sums per row
            # NOTE: the two resident inputs below are tiny; for very large N*Dp
            # they could be single-buffered (pipeline_mode=pl.Buffered(1)).
            pl.BlockSpec((Dp, N), lambda i: (0, 0)),             # csum^T bf16 (resident)
            pl.BlockSpec((1, N), lambda i: (0, 0)),              # rsqrt(||csum||^2) (resident)
            pl.BlockSpec((R, 1), lambda i: (i, 0)),              # row -> speaker index
            pl.BlockSpec(memory_space=pltpu.MemorySpace.SMEM),   # w
            pl.BlockSpec(memory_space=pltpu.MemorySpace.SMEM),   # b
        ],
        out_specs=pl.BlockSpec((1, 1, 128), lambda i: (i, 0, 0)),  # per-tile loss sum
        out_shape=jax.ShapeDtypeStruct((G, 1, 128), jnp.float32),
        compiler_params=pltpu.CompilerParams(
            dimension_semantics=("parallel",),
            vmem_limit_bytes=32 * 1024 * 1024,
        ),
    )(x2d, csum_row, csumT_bf16, inv_cn2, spk_col, w_arr, b_arr)

    # nn.CrossEntropyLoss default reduction is 'mean'.
    return jnp.sum(partial[:, 0, 0]) / (N * M)


def stable_supcont_ref(dvecs, w, b):
    """NumPy (float64) reference mirroring the PyTorch loops."""
    dv = np.asarray(dvecs, np.float64)
    N, M, _ = dv.shape
    cent = dv.mean(axis=1)
    csum = dv.sum(axis=1)
    cos = np.zeros((N, M, N), np.float64)
    for j in range(N):
        for i in range(M):
            x = dv[j, i]
            newc = cent.copy()
            newc[j] = (csum[j] - x) / (M - 1)
            c = (newc @ x) / (np.linalg.norm(x) * np.linalg.norm(newc, axis=1))
            cos[j, i] = np.maximum(c, 1e-6)
    s = cos * w + b
    smax = s.max(axis=-1, keepdims=True)
    lse = smax[..., 0] + np.log(np.exp(s - smax).sum(-1))
    tgt = s[np.arange(N)[:, None], np.arange(M)[None, :], np.arange(N)[:, None]]
    return (lse - tgt).mean()     # CrossEntropyLoss default reduction = 'mean'


if __name__ == "__main__":
    # Small shapes consistent with (num_speakers, utts_per_speaker, dvec_dim);
    # N=16, M=10 gives a 2-step parallel grid (v7x megacore) and exercises
    # D-padding (40 -> 128).
    N, M, D = 16, 10, 40
    init_w, init_b = 10.0, -5.0   # deterministic parameter init, as in __init__

    key = jax.random.PRNGKey(0)
    dvecs = jax.random.normal(key, (N, M, D), dtype=jnp.float32)

    loss = stable_supcont_loss(dvecs, init_w, init_b)
    loss = jax.block_until_ready(loss)

    ref = stable_supcont_ref(np.asarray(dvecs), init_w, init_b)
    assert np.isfinite(float(loss))
    # The other-speaker cosines go through one bf16 MXU pass (f32 accumulate),
    # the leave-one-out path is exact f32 -> allow ~1% tolerance.
    assert np.allclose(float(loss), float(ref), rtol=1e-2, atol=1e-2), \
        (float(loss), float(ref))
    print("KERNEL_OK")
</pallas_src>

<mosaic_0001>
module attributes {stable_mosaic.version = 11 : i64} {
  func.func @_ssc_kernel(%arg0: i32, %arg1: memref<80x128xf32, #tpu.memory_space<vmem>>, %arg2: memref<80x128xf32, #tpu.memory_space<vmem>>, %arg3: memref<128x16xbf16, #tpu.memory_space<vmem>>, %arg4: memref<1x16xf32, #tpu.memory_space<vmem>>, %arg5: memref<80x1xi32, #tpu.memory_space<vmem>>, %arg6: memref<1x1xf32, #tpu.memory_space<smem>>, %arg7: memref<1x1xf32, #tpu.memory_space<smem>>, %arg8: memref<1x1x128xf32, #tpu.memory_space<vmem>>) attributes {dimension_semantics = [#tpu.dimension_semantics<parallel>], iteration_bounds = array<i64: 2>, scalar_prefetch = 0 : i64, scratch_operands = 0 : i64, tpu.core_type = #tpu.core_type<tc>, window_params = [{transform_indices = @transform_0, window_bounds = array<i64: 80, 128>}, {transform_indices = @transform_1, window_bounds = array<i64: 80, 128>}, {pipeline_mode = #tpu.pipeline_mode<synchronous>, transform_indices = @transform_2, window_bounds = array<i64: 128, 16>}, {pipeline_mode = #tpu.pipeline_mode<synchronous>, transform_indices = @transform_3, window_bounds = array<i64: 1, 16>}, {transform_indices = @transform_4, window_bounds = array<i64: 80, 1>}, {transform_indices = @transform_5, window_bounds = array<i64: 1, 1>}, {transform_indices = @transform_6, window_bounds = array<i64: 1, 1>}, {transform_indices = @transform_7, window_bounds = array<i64: 1, 1, 128>}]} {
    %c0 = arith.constant 0 : index
    %c0_0 = arith.constant 0 : index
    %0 = vector.load %arg1[%c0, %c0_0] : memref<80x128xf32, #tpu.memory_space<vmem>>, vector<80x128xf32>
    %c0_1 = arith.constant 0 : index
    %c0_2 = arith.constant 0 : index
    %1 = vector.load %arg2[%c0_1, %c0_2] : memref<80x128xf32, #tpu.memory_space<vmem>>, vector<80x128xf32>
    %c0_3 = arith.constant 0 : index
    %c0_4 = arith.constant 0 : index
    %2 = vector.load %arg3[%c0_3, %c0_4] : memref<128x16xbf16, #tpu.memory_space<vmem>>, vector<128x16xbf16>
    %c0_5 = arith.constant 0 : index
    %c0_6 = arith.constant 0 : index
    %3 = vector.load %arg4[%c0_5, %c0_6] : memref<1x16xf32, #tpu.memory_space<vmem>>, vector<1x16xf32>
    %c0_7 = arith.constant 0 : index
    %c0_8 = arith.constant 0 : index
    %4 = vector.load %arg5[%c0_7, %c0_8] : memref<80x1xi32, #tpu.memory_space<vmem>>, vector<80x1xi32>
    %c0_9 = arith.constant 0 : index
    %c0_10 = arith.constant 0 : index
    %5 = memref.load %arg6[%c0_9, %c0_10] : memref<1x1xf32, #tpu.memory_space<smem>>
    %c0_11 = arith.constant 0 : index
    %c0_12 = arith.constant 0 : index
    %6 = memref.load %arg7[%c0_11, %c0_12] : memref<1x1xf32, #tpu.memory_space<smem>>
    %7 = arith.mulf %0, %0 : vector<80x128xf32>
    %cst = arith.constant dense<0.000000e+00> : vector<80xf32>
    %8 = vector.multi_reduction <add>, %7, %cst [1] : vector<80x128xf32> to vector<80xf32>
    %9 = vector.shape_cast %8 : vector<80xf32> to vector<80x1xf32>
    %10 = arith.subf %1, %0 : vector<80x128xf32>
    %11 = arith.mulf %0, %10 : vector<80x128xf32>
    %cst_13 = arith.constant dense<0.000000e+00> : vector<80xf32>
    %12 = vector.multi_reduction <add>, %11, %cst_13 [1] : vector<80x128xf32> to vector<80xf32>
    %13 = vector.shape_cast %12 : vector<80xf32> to vector<80x1xf32>
    %14 = arith.mulf %10, %10 : vector<80x128xf32>
    %cst_14 = arith.constant dense<0.000000e+00> : vector<80xf32>
    %15 = vector.multi_reduction <add>, %14, %cst_14 [1] : vector<80x128xf32> to vector<80xf32>
    %16 = vector.shape_cast %15 : vector<80xf32> to vector<80x1xf32>
    %17 = arith.mulf %9, %16 : vector<80x1xf32>
    %cst_15 = arith.constant 1.000000e-30 : f32
    %18 = vector.broadcast %cst_15 : f32 to vector<80x1xf32>
    %19 = arith.maximumf %17, %18 : vector<80x1xf32>
    %20 = math.rsqrt %19 : vector<80x1xf32>
    %21 = arith.mulf %13, %20 : vector<80x1xf32>
    %cst_16 = arith.constant 9.99999997E-7 : f32
    %22 = vector.broadcast %cst_16 : f32 to vector<80x1xf32>
    %23 = arith.maximumf %21, %22 : vector<80x1xf32>
    %24 = vector.broadcast %5 : f32 to vector<80x1xf32>
    %25 = arith.mulf %23, %24 : vector<80x1xf32>
    %26 = vector.broadcast %6 : f32 to vector<80x1xf32>
    %27 = arith.addf %25, %26 : vector<80x1xf32>
    %28 = arith.truncf %0 : vector<80x128xf32> to vector<80x128xbf16>
    %cst_17 = arith.constant dense<0.000000e+00> : vector<80x16xf32>
    %29 = tpu.matmul %28, %2, %cst_17 {dimension_numbers = #tpu.dot_dimension_numbers<[1], [0], [0], [1], [0, 0, 1, 1], [], []>} : vector<80x128xbf16>, vector<128x16xbf16>, vector<80x16xf32> -> vector<80x16xf32>
    %cst_18 = arith.constant 1.000000e-30 : f32
    %30 = vector.broadcast %cst_18 : f32 to vector<80x1xf32>
    %31 = arith.maximumf %9, %30 : vector<80x1xf32>
    %32 = math.rsqrt %31 : vector<80x1xf32>
    %33 = vector.broadcast %3 : vector<1x16xf32> to vector<80x16xf32>
    %34 = arith.mulf %29, %33 : vector<80x16xf32>
    %35 = vector.broadcast %32 : vector<80x1xf32> to vector<80x16xf32>
    %36 = arith.mulf %34, %35 : vector<80x16xf32>
    %cst_19 = arith.constant 9.99999997E-7 : f32
    %37 = vector.broadcast %cst_19 : f32 to vector<80x16xf32>
    %38 = arith.maximumf %36, %37 : vector<80x16xf32>
    %39 = vector.broadcast %5 : f32 to vector<80x16xf32>
    %40 = arith.mulf %38, %39 : vector<80x16xf32>
    %41 = vector.broadcast %6 : f32 to vector<80x16xf32>
    %42 = arith.addf %40, %41 : vector<80x16xf32>
    %43 = tpu.iota {dimensions = array<i32: 1>} : vector<80x16xi32>
    %44 = vector.broadcast %4 : vector<80x1xi32> to vector<80x16xi32>
    %45 = arith.cmpi eq, %43, %44 : vector<80x16xi32>
    %cst_20 = arith.constant 0xFF800000 : f32
    %46 = vector.broadcast %cst_20 : f32 to vector<80x16xf32>
    %47 = arith.select %45, %46, %42 : vector<80x16xi1>, vector<80x16xf32>
    %cst_21 = arith.constant dense<0xFF800000> : vector<80xf32>
    %48 = vector.multi_reduction <maximumf>, %47, %cst_21 [1] : vector<80x16xf32> to vector<80xf32>
    %49 = vector.shape_cast %48 : vector<80xf32> to vector<80x1xf32>
    %50 = vector.broadcast %49 : vector<80x1xf32> to vector<80x16xf32>
    %51 = arith.subf %47, %50 : vector<80x16xf32>
    %52 = math.exp %51 : vector<80x16xf32>
    %cst_22 = arith.constant dense<0.000000e+00> : vector<80xf32>
    %53 = vector.multi_reduction <add>, %52, %cst_22 [1] : vector<80x16xf32> to vector<80xf32>
    %54 = vector.shape_cast %53 : vector<80xf32> to vector<80x1xf32>
    %55 = math.log %54 : vector<80x1xf32>
    %56 = arith.addf %49, %55 : vector<80x1xf32>
    %57 = arith.maximumf %56, %27 : vector<80x1xf32>
    %58 = arith.minimumf %56, %27 : vector<80x1xf32>
    %59 = arith.subf %58, %57 : vector<80x1xf32>
    %60 = math.exp %59 : vector<80x1xf32>
    %cst_23 = arith.constant 1.000000e+00 : f32
    %61 = vector.broadcast %cst_23 : f32 to vector<80x1xf32>
    %62 = arith.addf %61, %60 : vector<80x1xf32>
    %63 = math.log %62 : vector<80x1xf32>
    %64 = arith.addf %57, %63 : vector<80x1xf32>
    %65 = arith.subf %64, %27 : vector<80x1xf32>
    %66 = vector.shape_cast %65 : vector<80x1xf32> to vector<1x80x1xf32>
    %cst_24 = arith.constant dense<0.000000e+00> : vector<1xf32>
    %67 = vector.multi_reduction <add>, %66, %cst_24 [1, 2] : vector<1x80x1xf32> to vector<1xf32>
    %68 = vector.shape_cast %67 : vector<1xf32> to vector<1x1x1xf32>
    %69 = vector.extract %68[0, 0, 0] : f32 from vector<1x1x1xf32>
    %70 = vector.broadcast %69 : f32 to vector<1x1x128xf32>
    %c0_25 = arith.constant 0 : index
    %c0_26 = arith.constant 0 : index
    %c0_27 = arith.constant 0 : index
    %71 = vector.load %arg8[%c0_25, %c0_26, %c0_27] : memref<1x1x128xf32, #tpu.memory_space<vmem>>, vector<1x1x128xf32>
    tpu.vector_store %arg8[%c0_25, %c0_26, %c0_27], %70 {strides = array<i32>} : memref<1x1x128xf32, #tpu.memory_space<vmem>>, vector<1x1x128xf32>,
    return
  }
  func.func @transform_0(%arg0: i32) -> (i32, i32) {
    %c0_i32 = arith.constant 0 : i32
    %c0_i32_0 = arith.constant 0 : i32
    return %arg0, %c0_i32 : i32, i32
  }
  func.func @transform_1(%arg0: i32) -> (i32, i32) {
    %c0_i32 = arith.constant 0 : i32
    %c0_i32_0 = arith.constant 0 : i32
    return %arg0, %c0_i32 : i32, i32
  }
  func.func @transform_2(%arg0: i32) -> (i32, i32) {
    %c0_i32 = arith.constant 0 : i32
    %c0_i32_0 = arith.constant 0 : i32
    %c0_i32_1 = arith.constant 0 : i32
    return %c0_i32, %c0_i32_0 : i32, i32
  }
  func.func @transform_3(%arg0: i32) -> (i32, i32) {
    %c0_i32 = arith.constant 0 : i32
    %c0_i32_0 = arith.constant 0 : i32
    %c0_i32_1 = arith.constant 0 : i32
    return %c0_i32, %c0_i32_0 : i32, i32
  }
  func.func @transform_4(%arg0: i32) -> (i32, i32) {
    %c0_i32 = arith.constant 0 : i32
    %c0_i32_0 = arith.constant 0 : i32
    return %arg0, %c0_i32 : i32, i32
  }
  func.func @transform_5(%arg0: i32) -> (i32, i32) {
    %c0_i32 = arith.constant 0 : i32
    %c0_i32_0 = arith.constant 0 : i32
    %c0_i32_1 = arith.constant 0 : i32
    return %c0_i32, %c0_i32_0 : i32, i32
  }
  func.func @transform_6(%arg0: i32) -> (i32, i32) {
    %c0_i32 = arith.constant 0 : i32
    %c0_i32_0 = arith.constant 0 : i32
    %c0_i32_1 = arith.constant 0 : i32
    return %c0_i32, %c0_i32_0 : i32, i32
  }
  func.func @transform_7(%arg0: i32) -> (i32, i32, i32) {
    %c0_i32 = arith.constant 0 : i32
    %c0_i32_0 = arith.constant 0 : i32
    %c0_i32_1 = arith.constant 0 : i32
    return %arg0, %c0_i32, %c0_i32_0 : i32, i32, i32
  }
}

</mosaic_0001>

<bundles_post_ra>
// kernel: tpu_custom_call.1
= control target key start
LH: loop header
LB: loop body
LE: loop exit
PB: predicated region body
PF: predicated region fallthrough
CT: control target
= control target key end

     0   :  { %s2709_s0 = inlined_call_operand.vmem [shape: f32[160,128], index: 0, kind: input, shape index: {}]   ;;  %s2710_s1 = inlined_call_operand.hbm [shape: f32[160,128], index: 1, kind: input, shape index: {}]   ;;  %s2711_s2 = inlined_call_operand.vmem [shape: bf16[128,16], index: 2, kind: input, shape index: {}]   ;;  %s2712_s3 = inlined_call_operand.vmem [shape: f32[1,16], index: 3, kind: input, shape index: {}]   ;;  %s2713_s4 = inlined_call_operand.vmem [shape: s32[160,1], index: 4, kind: input, shape index: {}]   ;;  %s2714_s5 = inlined_call_operand.<no memory space> [shape: f32[1,1], index: 5, kind: input, shape index: {}]   ;;  %s2715_s6 = inlined_call_operand.<no memory space> [shape: f32[1,1], index: 6, kind: input, shape index: {}]   ;;  %s2716_s7 = inlined_call_operand.hbm [shape: f32[2,1,128], index: 7, kind: output, shape index: {}]  }
   0x1   :  { %12 = sst [smem:[#allocation2]] %s2714_s5 }
   0x2   :  { %13 = sst [smem:[#allocation3]] %s2715_s6 }
   0x3   :  { %14 = vsyncpa [#allocation5], 0 }
   0x4   :  { %16 = vsyncpa [#allocation5 + $0x1], 0 }
   0x5   :  { %17 = vsyncpa [#allocation6], 0 }
   0x6   :  { %19 = vsyncpa [#allocation6 + $0x1], 0  ;;  %s1711_s28 = smov 0   ;;  %s1713_s29 = smov 0  }
   0x7   :  { %s1715_s30 = smov 0   ;;  %s1717_s8 = smov 0  }
   0x8 LB: > { %s1732_s5 = sadd.s32 4294967295, %s1660_s8   ;;  %s1313_s6 = sadd.s32 4294967294, %s1660_s8   ;;  %s1660_s8 = sphi %s1717_s8, %s2754_s8   ;;  %s1656_s30 = sphi %s1715_s30, %s2753_s30   ;;  %s1652_s29 = sphi %s1713_s29, %s2752_s29   ;;  %s1648_s28 = sphi %s1711_s28, %s2751_s28  }
   0x9   : > { %s1736_s9 = sadd.s32 1, %s1660_s8   ;;  %s58_s10 = sadd.s32 1, %s1656_s30 }
   0xa   : > { %s55_s11 = ssub.s32 %s1660_s8, %s1736_s9  ;;  %p65_p0 = scmp.ne.s32.totalorder %s1656_s30, %s1652_s29 }
   0xb   : > { %p56_p1 = scmp.eq.s32.totalorder %s55_s11, 0  ;;  %p66_p2 = scmp.eq.s32.totalorder %s1660_s8, 0 }
   0xc   : > { %p71_p3 = scmp.ne.s32.totalorder %s1652_s29, %s1648_s28  ;;  %p72_p4 = scmp.eq.s32.totalorder %s1732_s5, 0 }
   0xd   : > { %s1748_s12 = scalar_select %p56_p1, %s1656_s30, %s58_s10  }
   0xe   : > { %p67_p5 = por %p66_p2, %p65_p0  ;;  %p1750_p6 = por %p72_p4, %p71_p3 }
   0xf   : > { %p205_p7 = scmp.eq.s32.totalorder %s1732_s5, 1  ;;  %p211_p8 = scmp.eq.s32.totalorder %s1313_s6, 1 }
  0x10   : > { %p1315_p9 = scmp.ge.s32.totalorder %s1660_s8, 2  ;;  %p1403_p10 = scmp.lt.s32.totalorder %s1660_s8, 2 }
  0x11   : > { %p1757_p11 = por %p205_p7, %p65_p0  ;;  %p1761_p12 = por %p211_p8, %p71_p3 }
  0x12   : > { %s252_s16 = sand.u32 1, %s1656_s30   ;;  %s1354_s17 = smul.u32 80, %s1660_s8 }
  0x13   : > { %s1387_s18 = smul.u32 80, %s252_s16  ;;  %p1770_p13 = pnand %p1403_p10, %p67_p5 }
  0x14   : > { %s261_s21 = scalar_lea.hbm %s2710_s1, %s1354_s17  ;;  %s253_s26 = scalar_lea.sflag [#allocation5], %s252_s16 }
  0x15   : > { %s262_s23 = sshll.u32 %s261_s21, 4  ;;  %s256_s24 = scalar_lea.vmem [#allocation4], %s1387_s18  ;;  %s263_s23 = int_to_ptr.hbm [resolvable:$true] %s262_s23 }
  0x16   : > { %s264_s25 = sshll.u32 %s256_s24, 4  ;;  %s1564_s27 = sshra.s32 %s263_s23, 4  ;;  %s265_s25 = int_to_ptr.vmem [resolvable:$true] %s264_s25  ;;  %s1565_s27 = int_to_ptr.hbm [resolvable:$true] %s1564_s27 }
  0x17   : > { %s1566_s6 = scalar_lea.hbm %s1565_s27, 80  ;;  %p1568_p1 = pneg %p1770_p13 }
  0x18   : > { %p1567_p0 = scmp.ne.s32.totalorder %s1565_s27, %s1566_s6  ;;  %s1571_s17 = scalar_lea.hbm %s2710_s1, 160 }
  0x19   : > { %p1572_p4 = scmp.lt.s32.totalorder %s1565_s27, %s2710_s1  ;;  %p1573_p5 = scmp.lt.s32.totalorder %s1571_s17, %s1566_s6 }
  0x1a   : > { %p1569_p2 = pnand %p1568_p1, %p1567_p0 }
  0x1b   : > { %p1574_p7 = por %p1573_p5, %p1572_p4 }
  0x1c   : > { %p1570_p3 = pneg %p1569_p2 }
  0x1e   : > { %p1575_p8 = pnand %p1574_p7, %p1570_p3 }
  0x20   : > { %1578 = shalt.err (!%p1575_p8)
}
  0x21   : > { %s1662_s16 = smov 128   ;;  %s1663_s18 = smov 8  }
  0x22   : > { %1398 = dma.hbm_to_vmem [thread:$0]  (!%p1770_p13), %s263_s23, 1280, %s265_s25, %s253_s26, %s1662_s16, %s1662_s16, %s1663_s18  }
  0x23   : > { %p1317_p10 = scmp.ge.s32.totalorder %s1660_s8, 1  ;;  %p281_p0 = scmp.lt.s32.totalorder %s1660_s8, 3 }
  0x25   : > { %p282_p1 = pnand %p1317_p10, %p281_p0 }
  0x27   : > { %285 = sbr.rel (%p282_p1) target bundleno = 730 (0x2da), region = 48 }
  0x2c   : > { %s1787_s21 = sand.u32 1, %s1652_s29  }
  0x2d   : > { %s1388_s24 = smul.u32 80, %s1787_s21  ;;  %s288_s27 = scalar_lea.sflag [#allocation5], %s1787_s21 }
  0x2f   : > { %s1791_s6 = scalar_lea.vmem [#allocation4], %s1388_s24 }
  0x30   : > { %1639 = dma.done.wait (%p1750_p6), %s288_s27, 1280  }
  0x31   : > { %1641 = vsyncadd (%p1750_p6), %s288_s27, 4294966016  ;;  %s332_s22 = smul.u32 10, %s1732_s5  ;;  %v1362_v0 = vld [vmem:[%s2711_s2 + $0x38] sm:$0xff]  ;;  %v1361_v7 = vld [vmem:[%s2711_s2 + $0x30] sm:$0xff]  ;;  %v1664_v14 = vmov 0   ;;  %s1219_s26 = scalar_lea.hbm %s2716_s7, %s1732_s5 }
  0x32   : > { %709 = vmatpush.bf16.msra.mxu0 %v1362_v0  ;;  %1363 = vmatpush.bf16.msra.mxu1 %v1362_v0  ;;  %v1360_v10 = vld [vmem:[%s2711_s2 + $0x28] sm:$0xff]  ;;  %v1359_v16 = vld [vmem:[%s2711_s2 + $0x20] sm:$0xff]  ;;  %v1358_v19 = vld [vmem:[%s2711_s2 + $0x18] sm:$0xff]  ;;  %s331_s10 = scalar_lea.vmem [#allocation7], %s1787_s21  ;;  %s1223_s13 = sshll.u32 %s1219_s26, 4  ;;  %s1224_s13 = int_to_ptr.hbm [resolvable:$true] %s1223_s13 }
  0x33   : > { %p333_p13 = scmp.lt.s32.totalorder %s332_s22, 19  ;;  %1364 = vmatpush.bf16.msra.mxu2 %v1362_v0  ;;  %1365 = vmatpush.bf16.msra.mxu3 %v1362_v0  ;;  %v1357_v24 = vld [vmem:[%s2711_s2 + $0x10] sm:$0xff]  ;;  %v1356_v25 = vld [vmem:[%s2711_s2 + $0x8] sm:$0xff]  ;;  %v1355_v28 = vld [vmem:[%s2711_s2] sm:$0xff]  ;;  %s1221_s11 = sshll.u32 %s331_s10, 4  ;;  %s1222_s11 = int_to_ptr.vmem [resolvable:$true] %s1221_s11 }
  0x34   : > { %1441 = vset.pattern.permute.xlu2 %v1664_v14  ;;  %1440 = vset.pattern.permute.xlu1 %v1664_v14  ;;  %v357_v44 = vld [vmem:[%s1791_s6 + $0x10] sm:$0xff]  ;;  %v360_v47 = vld [vmem:[%s1791_s6 + $0x28] sm:$0xff]  ;;  %v355_v50 = vld [vmem:[%s1791_s6] sm:$0xff]  ;;  %s1211_s20 = scalar_lea.sflag [#allocation6], %s1787_s21  ;;  %s1614_s5 = scalar_lea.hbm %s2716_s7, 2 }
  0x35   : > { %s2756_s22 = smov (!%p333_p13, %s332_s22), 19  ;;  %1442 = vset.pattern.permute.xlu0 %v1664_v14  ;;  %v356_v48 = vld [vmem:[%s1791_s6 + $0x8] sm:$0xff]  ;;  %v359_v55 = vld [vmem:[%s1791_s6 + $0x20] sm:$0xff]  ;;  %v358_v57 = vld [vmem:[%s1791_s6 + $0x18] sm:$0xff] }
  0x36   : > { %s1318_s23 = sshll.u32 %s2756_s22, 3  ;;  %710 = vmatpush.bf16.msra.mxu0 %v1361_v7  ;;  %1366 = vmatpush.bf16.msra.mxu1 %v1361_v7  ;;  %s392_s22 = sld [smem:[#allocation2]] }
  0x37   : > { %s1809_s17 = scalar_lea.vmem %s2709_s0, %s1318_s23  ;;  %1367 = vmatpush.bf16.msra.mxu2 %v1361_v7  ;;  %1368 = vmatpush.bf16.msra.mxu3 %v1361_v7  ;;  %s343_s18 = scalar_lea.vmem %s2713_s4, %s1318_s23 }
  0x38   : > { %v1812_v1 = vld [vmem:[%s1809_s17 + $0x20] sm:$0xff]  ;;  %v1815_v2 = vld [vmem:[%s1809_s17 + $0x10] sm:$0xff]  ;;  %v1830_v8 = vld [vmem:[%s1809_s17 + $0x28] sm:$0xff]  ;;  %s2031_s23 = sld [smem:[#allocation3]] }
  0x39   : > { %v1818_v3 = vld [vmem:[%s1809_s17] sm:$0xff]  ;;  %v398_v4 = vmul.f32 %v1812_v1, %v1812_v1  ;;  %v396_v5 = vmul.f32 %v1815_v2, %v1815_v2  ;;  %v1833_v9 = vld [vmem:[%s1809_s17 + $0x18] sm:$0xff]  ;;  %v1839_v11 = vld [vmem:[%s1809_s17 + $0x8] sm:$0xff]  ;;  %v399_v12 = vmul.f32 %v1830_v8, %v1830_v8  ;;  %v658_v31 = vpack.c.bf16 %v1830_v8, %v1812_v1 }
  0x3a   : > { %v394_v6 = vmul.f32 %v1818_v3, %v1818_v3  ;;  %v397_v13 = vmul.f32 %v1833_v9, %v1833_v9  ;;  %v395_v15 = vmul.f32 %v1839_v11, %v1839_v11  ;;  %711 = vmatpush.bf16.msra.mxu0 %v1360_v10  ;;  %1369 = vmatpush.bf16.msra.mxu1 %v1360_v10  ;;  %v1851_v17 = vld [vmem:[%s1809_s17 + $0x40] sm:$0xff]  ;;  %v1854_v18 = vld [vmem:[%s1809_s17 + $0x38] sm:$0xff]  ;;  %v1860_v20 = vld [vmem:[%s1809_s17 + $0x30] sm:$0xff] }
  0x3b   : > { %412 = vadd.xlane.f32.xlu2 %v398_v4  ;;  %408 = vadd.xlane.f32.xlu1 %v396_v5  ;;  %v402_v21 = vmul.f32 %v1851_v17, %v1851_v17  ;;  %v401_v22 = vmul.f32 %v1854_v18, %v1854_v18  ;;  %v400_v23 = vmul.f32 %v1860_v20, %v1860_v20  ;;  %v1875_v26 = vld [vmem:[%s1809_s17 + $0x48] sm:$0xff]  ;;  %v382_v34 = vld [vmem:[%s343_s18] sm:$0xff]  ;;  %v384_v35 = vld [vmem:[%s343_s18 + $0x10] sm:$0xff]  ;;  %s1608_s17 = sshra.s32 %s1224_s13, 4  ;;  %s1609_s17 = int_to_ptr.hbm [resolvable:$true] %s1608_s17 }
  0x3c   : > { %404 = vadd.xlane.f32.xlu0 %v394_v6  ;;  %1370 = vmatpush.bf16.msra.mxu2 %v1360_v10  ;;  %v403_v27 = vmul.f32 %v1875_v26, %v1875_v26  ;;  %v656_v29 = vpack.c.bf16 %v1839_v11, %v1818_v3  ;;  %v657_v30 = vpack.c.bf16 %v1833_v9, %v1815_v2  ;;  %v383_v33 = vld [vmem:[%s343_s18 + $0x8] sm:$0xff]  ;;  %v385_v37 = vld [vmem:[%s343_s18 + $0x18] sm:$0xff]  ;;  %v386_v38 = vld [vmem:[%s343_s18 + $0x20] sm:$0xff]  ;;  %s1610_s16 = scalar_lea.hbm %s1609_s17, 1  ;;  %p1615_p4 = scmp.lt.s32.totalorder %s1609_s17, %s2716_s7 }
  0x3d   : > { %1371 = vmatpush.bf16.msra.mxu3 %v1360_v10  ;;  %v659_v32 = vpack.c.bf16 %v1854_v18, %v1860_v20  ;;  %v660_v36 = vpack.c.bf16 %v1875_v26, %v1851_v17  ;;  %v391_v39 = vld [vmem:[%s343_s18 + $0x48] sm:$0xff]  ;;  %v388_v41 = vld [vmem:[%s343_s18 + $0x30] sm:$0xff]  ;;  %v389_v42 = vld [vmem:[%s343_s18 + $0x38] sm:$0xff]  ;;  %v1899_v45 = vsub.f32 %v357_v44, %v1815_v2  ;;  %v1906_v49 = vsub.f32 %v360_v47, %v1830_v8  ;;  %p1611_p6 = scmp.ne.s32.totalorder %s1609_s17, %s1610_s16  ;;  %p1616_p5 = scmp.lt.s32.totalorder %s1614_s5, %s1610_s16 }
  0x3e   : > { %712 = vmatpush.bf16.msra.mxu0 %v1359_v16  ;;  %1372 = vmatpush.bf16.msra.mxu1 %v1359_v16  ;;  %v387_v40 = vld [vmem:[%s343_s18 + $0x28] sm:$0xff]  ;;  %v390_v43 = vld [vmem:[%s343_s18 + $0x40] sm:$0xff]  ;;  %v1910_v51 = vsub.f32 %v356_v48, %v1839_v11  ;;  %v1915_v53 = vsub.f32 %v355_v50, %v1818_v3  ;;  %v1924_v58 = vsub.f32 %v359_v55, %v1812_v1 }
  0x3f   : > { %v466_v46 = vmul.f32 %v1899_v45, %v1899_v45  ;;  %v469_v52 = vmul.f32 %v1906_v49, %v1906_v49  ;;  %v1927_v59 = vsub.f32 %v358_v57, %v1833_v9  ;;  %p1612_p2 = pnand %p1611_p6, %p1757_p11  ;;  %p1617_p7 = por %p1616_p5, %p1615_p4 }
  0x40   : > { %1373 = vmatpush.bf16.msra.mxu2 %v1359_v16  ;;  %v465_v54 = vmul.f32 %v1910_v51, %v1910_v51  ;;  %v464_v56 = vmul.f32 %v1915_v53, %v1915_v53  ;;  %v468_v60 = vmul.f32 %v1924_v58, %v1924_v58 }
  0x41   : > { %1374 = vmatpush.bf16.msra.mxu3 %v1359_v16  ;;  %v467_v61 = vmul.f32 %v1927_v59, %v1927_v59  ;;  %p1613_p3 = pneg %p1612_p2 }
  0x42   : > { %713 = vmatpush.bf16.msra.mxu0 %v1358_v19  ;;  %1375 = vmatpush.bf16.msra.mxu1 %v1358_v19 }
  0x43   : > { %414 = vadd.xlane.f32.xlu2 %v399_v12  ;;  %410 = vadd.xlane.f32.xlu1 %v397_v13  ;;  %p1618_p8 = pnand %p1617_p7, %p1613_p3 }
  0x44   : > { %406 = vadd.xlane.f32.xlu0 %v395_v15  ;;  %1376 = vmatpush.bf16.msra.mxu2 %v1358_v19 }
  0x45   : > { %1377 = vmatpush.bf16.msra.mxu3 %v1358_v19 }
  0x46   : > { %714 = vmatpush.bf16.msra.mxu0 %v1357_v24  ;;  %1378 = vmatpush.bf16.msra.mxu1 %v1357_v24 }
  0x48   : > { %1379 = vmatpush.bf16.msra.mxu2 %v1357_v24 }
  0x49   : > { %1380 = vmatpush.bf16.msra.mxu3 %v1357_v24 }
  0x4a   : > { %715 = vmatpush.bf16.msra.mxu0 %v1356_v25  ;;  %1381 = vmatpush.bf16.msra.mxu1 %v1356_v25 }
  0x4b   : > { %420 = vadd.xlane.f32.xlu2 %v402_v21  ;;  %418 = vadd.xlane.f32.xlu1 %v401_v22 }
  0x4c   : > { %416 = vadd.xlane.f32.xlu0 %v400_v23  ;;  %1382 = vmatpush.bf16.msra.mxu2 %v1356_v25 }
  0x4d   : > { %1383 = vmatpush.bf16.msra.mxu3 %v1356_v25 }
  0x4e   : > { %716 = vmatpush.bf16.msra.mxu0 %v1355_v28  ;;  %1384 = vmatpush.bf16.msra.mxu1 %v1355_v28 }
  0x50   : > { %1385 = vmatpush.bf16.msra.mxu2 %v1355_v28 }
  0x51   : > { %1386 = vmatpush.bf16.msra.mxu3 %v1355_v28  ;;  %717 = vmatmul.bf16.vlgmr.msra.gmra.mxu0 %v656_v29 }
  0x52   : > { %722 = vmatmul.bf16.vlgmr.msra.gmra.mxu1 %v657_v30 }
  0x53   : > { %727 = vmatmul.bf16.vlgmr.msra.gmra.mxu2 %v658_v31 }
  0x54   : > { %422 = vadd.xlane.f32.xlu0 %v403_v27  ;;  %732 = vmatmul.bf16.vlgmr.msra.gmra.mxu3 %v659_v32 }
  0x63   : > { %912 = vperm.xlu2 %1441, %v383_v33  }
  0x64   : > { %909 = vperm.xlu1 %1440, %v382_v34   ;;  %737 = vmatmul.bf16.gmra.mxu3 %v660_v36 }
  0x68   : > { %915 = vperm.xlu0 %1442, %v384_v35  }
  0x6b   : > { %918 = vperm.xlu2 %1441, %v385_v37  }
  0x6c   : > { %921 = vperm.xlu1 %1440, %v386_v38  }
  0x70   : > { %936 = vperm.xlu0 %1442, %v391_v39  }
  0x73   : > { %924 = vperm.xlu2 %1441, %v387_v40  }
  0x74   : > { %927 = vperm.xlu1 %1440, %v388_v41  }
  0x7b   : > { %930 = vperm.xlu2 %1441, %v389_v42  }
  0x7c   : > { %933 = vperm.xlu1 %1440, %v390_v43  }
  0x9a   : > { %478 = vadd.xlane.f32.xlu0 %v466_v46 }
  0xa2   : > { %484 = vadd.xlane.f32.xlu0 %v469_v52 }
  0xa4   : > { %476 = vadd.xlane.f32.xlu2 %v465_v54 }
  0xa6   : > { %474 = vadd.xlane.f32.xlu1 %v464_v56 }
  0xac   : > { %482 = vadd.xlane.f32.xlu2 %v468_v60 }
  0xae   : > { %v1933_v62 = vpop.xlane.xlu1 %408  ;;  %480 = vadd.xlane.f32.xlu1 %v467_v61  ;;  %v1937_v0 = vpop.xlane.xlu2 %412 }
  0xaf   : > { %v1935_v63 = vpop.xlane.xlu0 %404  ;;  %v1940_v4 = vmax.f32 %v1933_v62, 1e-30  ;;  %v1952_v10 = vmax.f32 %v1937_v0, 1e-30 }
  0xb0   : > { %v1943_v5 = vmax.f32 %v1935_v63, 1e-30 }
  0xb1   : > { %1444 = vrsqrt.f32 %v1940_v4  ;;  %vm779_vm0 = vweird.f32 %v1940_v4  ;;  %vm799_vm1 = vweird.f32 %v1952_v10 }
  0xb2   : > { %1446 = vrsqrt.f32 %v1943_v5  ;;  %vm759_vm3 = vweird.f32 %v1943_v5 }
  0xb3   : > { %1448 = vrsqrt.f32 %v1952_v10 }
  0xb6   : > { %v1945_v6 = vpop.xlane.xlu1 %410  ;;  %v1961_v14 = vpop.xlane.xlu2 %414 }
  0xb7   : > { %v1948_v7 = vpop.xlane.xlu0 %406  ;;  %v1955_v12 = vmax.f32 %v1945_v6, 1e-30  ;;  %v1963_v15 = vpop.eup %1444  ;;  %v1967_v16 = vmax.f32 %v1961_v14, 1e-30 }
  0xb8   : > { %v1958_v13 = vmax.f32 %v1948_v7, 1e-30  ;;  %v1969_v19 = vpop.eup %1446  ;;  %v774_v22 = vmul.f32 %v1963_v15, %v1940_v4  ;;  %vm780_vm2 = vweird.f32 %v1963_v15 }
  0xb9   : > { %1450 = vrsqrt.f32 %v1955_v12  ;;  %v754_v24 = vmul.f32 %v1969_v19, %v1943_v5  ;;  %v1982_v25 = vpop.eup %1448  ;;  %vm760_vm4 = vweird.f32 %v1969_v19  ;;  %vm789_vm5 = vweird.f32 %v1955_v12  ;;  %vm2048_vm7 = vmor %vm779_vm0, %vm780_vm2 }
  0xba   : > { %1452 = vrsqrt.f32 %v1958_v13  ;;  %v775_v29 = vmul.f32 %v1963_v15, %v774_v22  ;;  %v794_v32 = vmul.f32 %v1982_v25, %v1952_v10  ;;  %vm769_vm6 = vweird.f32 %v1958_v13  ;;  %vm2065_vm10 = vmor %vm759_vm3, %vm760_vm4 }
  0xbb   : > { %1454 = vrsqrt.f32 %v1967_v16  ;;  %v755_v31 = vmul.f32 %v1969_v19, %v754_v24  ;;  %vm800_vm8 = vweird.f32 %v1982_v25  ;;  %vm809_vm12 = vweird.f32 %v1967_v16 }
  0xbc   : > { %v776_v38 = vmul.f32 0.5, %v775_v29  ;;  %v795_v40 = vmul.f32 %v1982_v25, %v794_v32  ;;  %vm2084_vm13 = vmor %vm799_vm1, %vm800_vm8  ;;  %vm958_vm2 = vcmask 130048  }
  0xbd   : > { %v756_v39 = vmul.f32 0.5, %v755_v31 }
  0xbe   : > { %v1990_v30 = vpop.xlane.xlu1 %418  ;;  %v2009_v42 = vpop.xlane.xlu2 %420  ;;  %v777_v48 = vsub.f32 1.5, %v776_v38  ;;  %v796_v54 = vmul.f32 0.5, %v795_v40  ;;  %v2041_v38 = vld [vmem:[%s2712_s3] ss:$0 sm:$0xff] }
  0xbf   : > { %v1972_v21 = vpop.xlane.xlu0 %416  ;;  %v1985_v27 = vpop.eup %1450  ;;  %v2002_v36 = vmax.f32 %v1990_v30, 1e-30  ;;  %2723 = vst [vmem:[#allocation10_spill] sm:$0xff] %v2009_v42  ;;  %v2014_v44 = vmax.f32 %v2009_v42, 1e-30  ;;  %v757_v52 = vsub.f32 1.5, %v756_v39 }
  0xc0   : > { %v1977_v23 = vmax.f32 %v1972_v21, 1e-30  ;;  %v1987_v28 = vpop.eup %1452  ;;  %v784_v34 = vmul.f32 %v1985_v27, %v1955_v12  ;;  %v778_v61 = vmul.f32 %v1963_v15, %v777_v48  ;;  %v797_v24 = vsub.f32 1.5, %v796_v54 }
  0xc1   : > { %v1995_v33 = vpop.eup %1454  ;;  %v764_v35 = vmul.f32 %v1987_v28, %v1958_v13  ;;  %v758_v29 = vmul.f32 %v1969_v19, %v757_v52  ;;  %vm790_vm11 = vweird.f32 %v1985_v27  ;;  %vm770_vm14 = vweird.f32 %v1987_v28 }
  0xc2   : > { %1456 = vrsqrt.f32 %v1977_v23  ;;  %v804_v43 = vmul.f32 %v1995_v33, %v1967_v16  ;;  %v785_v46 = vmul.f32 %v1985_v27, %v784_v34  ;;  %v906_v34 = vlaneseq  ;;  %vm2106_vm0 = vmor %vm789_vm5, %vm790_vm11 }
  0xc3   : > { %v765_v47 = vmul.f32 %v1987_v28, %v764_v35  ;;  %1458 = vrsqrt.f32 %v2002_v36  ;;  %v2036_v35 = vstv %s392_s22  ;;  %vm819_vm9 = vweird.f32 %v1977_v23  ;;  %vm2117_vm1 = vmor %vm769_vm6, %vm770_vm14 }
  0xc4   : > { %v805_v55 = vmul.f32 %v1995_v33, %v804_v43  ;;  %1460 = vrsqrt.f32 %v2014_v44  ;;  %v786_v56 = vmul.f32 0.5, %v785_v46  ;;  %v782_v48 = vsel %vm2048_vm7, %v1963_v15, %v778_v61 }
  0xc5   : > { %v766_v57 = vmul.f32 0.5, %v765_v47  ;;  %vm810_vm3 = vweird.f32 %v1995_v33  ;;  %vm829_vm8 = vweird.f32 %v2002_v36 }
  0xc6   : > { %v806_v31 = vmul.f32 0.5, %v805_v55  ;;  %v787_v39 = vsub.f32 1.5, %v786_v56  ;;  %v762_v55 = vsel %vm2065_vm10, %v1969_v19, %v758_v29  ;;  %v798_v56 = vmul.f32 %v1982_v25, %v797_v24  ;;  %vm2175_vm7 = vmor %vm809_vm12, %vm810_vm3 }
  0xc7   : > { %v2034_v32 = vpop.xlane.xlu0 %422  ;;  %v767_v40 = vsub.f32 1.5, %v766_v57 }
  0xc8   : > { %v2004_v37 = vpop.eup %1456  ;;  %2724 = vst [vmem:[#allocation11_spill] sm:$0xff] %v2034_v32  ;;  %v807_v15 = vsub.f32 1.5, %v806_v31  ;;  %v788_v24 = vmul.f32 %v1985_v27, %v787_v39  ;;  %v362_v39 = vld [vmem:[%s1791_s6 + $0x38] sm:$0xff] }
  0xc9   : > { %v814_v41 = vmul.f32 %v2004_v37, %v1977_v23  ;;  %v2026_v22 = vpop.eup %1458  ;;  %vm820_vm15 = vweird.f32 %v2004_v37  ;;  %v768_v29 = vmul.f32 %v1987_v28, %v767_v40  ;;  %v2111_v40 = vstv %s2031_s23 }
  0xca   : > { %v2053_v43 = vpop.eup %1460  ;;  %v824_v46 = vmul.f32 %v2026_v22, %v2002_v36  ;;  %vm2129_vm4 = vmor %vm819_vm9, %vm820_vm15  ;;  %v792_v13 = vsel %vm2106_vm0, %v1985_v27, %v788_v24  ;;  %vm839_vm9 = vweird.f32 %v2014_v44  ;;  %vm830_vm14 = vweird.f32 %v2026_v22 }
  0xcb   : > { %v815_v50 = vmul.f32 %v2004_v37, %v814_v41  ;;  %v834_v19 = vmul.f32 %v2053_v43, %v2014_v44 }
  0xcc   : > { %v825_v31 = vmul.f32 %v2026_v22, %v824_v46 }
  0xcd   : > { %v816_v60 = vmul.f32 0.5, %v815_v50  ;;  %v2070_v50 = vmax.f32 %v2034_v32, 1e-30  ;;  %v835_v12 = vmul.f32 %v2053_v43, %v834_v19 }
  0xce   : > { %v718_v54 = vpop.f32.mrf.mxu0 }
  0xcf   : > { %v817_v47 = vsub.f32 1.5, %v816_v60  ;;  %v723_v52 = vpop.f32.mrf.mxu1  ;;  %v856_v60 = vmul.f32 %v2041_v38, %v718_v54  ;;  %1462 = vrsqrt.f32 %v2070_v50  ;;  %v802_v54 = vsel %vm2084_vm13, %v1982_v25, %v798_v56 }
  0xd0   : > { %v858_v5 = vmul.f32 %v2041_v38, %v723_v52  ;;  %v2097_v52 = vand.u32 127, %v906_v34  ;;  %v772_v56 = vsel %vm2117_vm1, %v1987_v28, %v768_v29  ;;  %v836_v34 = vmul.f32 0.5, %v835_v12  ;;  %vm831_vm1 = vmor %vm829_vm8, %vm830_vm14 }
  0xd1   : > { %v866_v4 = vmul.f32 %v856_v60, %v762_v55  ;;  %v818_v10 = vmul.f32 %v2004_v37, %v817_v47  ;;  %v2140_v60 = vmul.f32 0.5, %v825_v31  ;;  %vm840_vm13 = vweird.f32 %v2053_v43 }
  0xd2   : > { %v868_v41 = vmul.f32 %v858_v5, %v782_v48  ;;  %v2123_v48 = vpop.permute.xlu2 %912  ;;  %v808_v5 = vmul.f32 %v1995_v33, %v807_v15  ;;  %vm2220_vm15 = vmor %vm839_vm9, %vm840_vm13  ;;  %vm849_vm3 = vweird.f32 %v2070_v50 }
  0xd3   : > { %v876_v47 = vmax.f32 %v866_v4, 1e-06  ;;  %v822_v4 = vsel %vm2129_vm4, %v2004_v37, %v818_v10  ;;  %v827_v16 = vsub.f32 1.5, %v2140_v60  ;;  %vm939_vm10 = vcmp.eq.s32.totalorder %v2097_v52, %v2123_v48 }
  0xd4   : > { %v878_v46 = vmax.f32 %v868_v41, 1e-06 }
  0xd5   : > { %v886_v23 = vmul.f32 %v876_v47, %v2036_v35  ;;  %v2156_v10 = vpop.eup %1462 }
  0xd6   : > { %v910_v57 = vpop.permute.xlu1 %909  ;;  %v888_v61 = vmul.f32 %v878_v46, %v2036_v35  ;;  %v728_v19 = vpop.f32.mrf.mxu2  ;;  %vm850_vm4 = vweird.f32 %v2156_v10 }
  0xd7   : > { %v733_v41 = vpop.f32.mrf.mxu3  ;;  %vm938_vm5 = vcmp.eq.s32.totalorder %v2097_v52, %v910_v57  ;;  %v860_v27 = vmul.f32 %v2041_v38, %v728_v19  ;;  %v725_v15 = vpop.f32.mrf.mxu1  ;;  %v896_v47 = vadd.f32 %v886_v23, %v2111_v40  ;;  %v844_v57 = vmul.f32 %v2156_v10, %v2070_v50 }
  0xd8   : > { %v862_v28 = vmul.f32 %v2041_v38, %v733_v41  ;;  %v720_v24 = vpop.f32.mrf.mxu0  ;;  %v859_v29 = vmul.f32 %v2041_v38, %v725_v15  ;;  %v898_v37 = vadd.f32 %v888_v61, %v2111_v40  ;;  %v2159_v41 = vsub.f32 %v362_v39, %v1854_v18 }
  0xd9   : > { %v857_v46 = vmul.f32 %v2041_v38, %v720_v24  ;;  %v870_v55 = vmul.f32 %v860_v27, %v802_v54 }
  0xda   : > { %v916_v25 = vpop.permute.xlu0 %915  ;;  %v872_v19 = vmul.f32 %v862_v28, %v822_v4  ;;  %v869_v32 = vmul.f32 %v859_v29, %v792_v13  ;;  %v471_v28 = vmul.f32 %v2159_v41, %v2159_v41  ;;  %v837_v29 = vsub.f32 1.5, %v836_v34 }
  0xdb   : > { %vm940_vm6 = vcmp.eq.s32.totalorder %v2097_v52, %v916_v25  ;;  %v867_v42 = vmul.f32 %v857_v46, %v772_v56  ;;  %v2163_v25 = vsel %vm938_vm5, -inf, %v896_v47  ;;  %v880_v24 = vmax.f32 %v870_v55, 1e-06  ;;  %v919_v46 = vpop.permute.xlu2 %918 }
  0xdc   : > { %v2165_v15 = vsel %vm940_vm6, -inf, %v898_v37  ;;  %v882_v23 = vmax.f32 %v872_v19, 1e-06  ;;  %v959_v61 = vsel %vm958_vm2, %v2163_v25, -inf  ;;  %v879_v13 = vmax.f32 %v869_v32, 1e-06  ;;  %vm851_vm6 = vmor %vm849_vm3, %vm850_vm4 }
  0xdd   : > { %v965_v54 = vsel %vm958_vm2, %v2165_v15, -inf  ;;  %v877_v56 = vmax.f32 %v867_v42, 1e-06  ;;  %960 = vmax.xlane.f32.xlu2 %v959_v61  ;;  %v890_v4 = vmul.f32 %v880_v24, %v2036_v35  ;;  %v812_v42 = vsel %vm2175_vm7, %v1995_v33, %v808_v5 }
  0xde   : > { %v922_v31 = vpop.permute.xlu1 %921  ;;  %966 = vmax.xlane.f32.xlu0 %v965_v54  ;;  %v892_v39 = vmul.f32 %v882_v23, %v2036_v35  ;;  %v730_v27 = vpop.f32.mrf.mxu2  ;;  %v845_v55 = vmul.f32 %v2156_v10, %v844_v57  ;;  %v889_v19 = vmul.f32 %v879_v13, %v2036_v35  ;;  %v363_v23 = vld [vmem:[%s1791_s6 + $0x40] sm:$0xff]  ;;  %v828_v61 = vmul.f32 %v2026_v22, %v827_v16 }
  0xdf   : > { %v735_v32 = vpop.f32.mrf.mxu3  ;;  %v887_v47 = vmul.f32 %v877_v56, %v2036_v35  ;;  %v861_v37 = vmul.f32 %v2041_v38, %v730_v27  ;;  %v900_v60 = vadd.f32 %v890_v4, %v2111_v40  ;;  %vm942_vm11 = vcmp.eq.s32.totalorder %v2097_v52, %v922_v31 }
  0xe0   : > { %v902_v5 = vadd.f32 %v892_v39, %v2111_v40  ;;  %v863_v31 = vmul.f32 %v2041_v38, %v735_v32  ;;  %v838_v13 = vmul.f32 %v2053_v43, %v837_v29  ;;  %v846_v4 = vmul.f32 0.5, %v845_v55  ;;  %v361_v55 = vld [vmem:[%s1791_s6 + $0x30] sm:$0xff] }
  0xe1   : > { %v871_v24 = vmul.f32 %v861_v37, %v812_v42  ;;  %v2201_v34 = vsel %vm942_vm11, -inf, %v900_v60  ;;  %v897_v56 = vadd.f32 %v887_v47, %v2111_v40  ;;  %v899_v27 = vadd.f32 %v889_v19, %v2111_v40 }
  0xe2   : > { %v971_v54 = vsel %vm958_vm2, %v2201_v34, -inf  ;;  %v2226_v42 = vsub.f32 %v363_v23, %v1851_v17  ;;  %vm941_vm0 = vcmp.eq.s32.totalorder %v2097_v52, %v919_v46  ;;  %v832_v32 = vsel %vm831_vm1, %v2026_v22, %v828_v61 }
  0xe3   : > { %972 = vmax.xlane.f32.xlu1 %v971_v54  ;;  %v881_v39 = vmax.f32 %v871_v24, 1e-06  ;;  %v842_v29 = vsel %vm2220_vm15, %v2053_v43, %v838_v13  ;;  %v2241_v37 = vsel %vm939_vm10, -inf, %v897_v56  ;;  %v847_v46 = vsub.f32 1.5, %v846_v4  ;;  %v925_v19 = vpop.permute.xlu2 %924 }
  0xe4   : > { %v2244_v36 = vsel %vm941_vm0, -inf, %v899_v27  ;;  %v472_v22 = vmul.f32 %v2226_v42, %v2226_v42  ;;  %v962_v43 = vsel %vm958_vm2, %v2241_v37, -inf  ;;  %v2255_v24 = vsub.f32 %v361_v55, %v1860_v20  ;;  %v364_v55 = vld [vmem:[%s1791_s6 + $0x48] sm:$0xff] }
  0xe5   : > { %488 = vadd.xlane.f32.xlu2 %v471_v28  ;;  %v873_v28 = vmul.f32 %v863_v31, %v832_v32  ;;  %v891_v60 = vmul.f32 %v881_v39, %v2036_v35  ;;  %v968_v48 = vsel %vm958_vm2, %v2244_v36, -inf  ;;  %v848_v61 = vmul.f32 %v2156_v10, %v847_v46 }
  0xe6   : > { %v928_v33 = vpop.permute.xlu1 %927  ;;  %vm943_vm5 = vcmp.eq.s32.totalorder %v2097_v52, %v925_v19  ;;  %v470_v13 = vmul.f32 %v2255_v24, %v2255_v24 }
  0xe7   : > { %vm944_vm12 = vcmp.eq.s32.totalorder %v2097_v52, %v928_v33  ;;  %v738_v44 = vpop.f32.mrf.mxu3  ;;  %v901_v54 = vadd.f32 %v891_v60, %v2111_v40  ;;  %v852_v4 = vsel %vm851_vm6, %v2156_v10, %v848_v61  ;;  %v434_v61 = vmul.f32 %v1915_v53, %v1818_v3 }
  0xe8   : > { %v2209_v12 = vsel %vm944_vm12, -inf, %v902_v5  ;;  %v864_v47 = vmul.f32 %v2041_v38, %v738_v44  ;;  %v883_v5 = vmax.f32 %v873_v28, 1e-06 }
  0xe9   : > { %v977_v57 = vsel %vm958_vm2, %v2209_v12, -inf  ;;  %v2267_v39 = vsel %vm943_vm5, -inf, %v901_v54  ;;  %v437_v54 = vmul.f32 %v1927_v59, %v1833_v9 }
  0xea   : > { %978 = vmax.xlane.f32.xlu0 %v977_v57  ;;  %v874_v33 = vmul.f32 %v864_v47, %v842_v29  ;;  %v893_v50 = vmul.f32 %v883_v5, %v2036_v35  ;;  %v974_v44 = vsel %vm958_vm2, %v2267_v39, -inf  ;;  %v937_v47 = vpop.permute.xlu0 %936 }
  0xeb   : > { %963 = vmax.xlane.f32.xlu1 %v962_v43  ;;  %v931_v27 = vpop.permute.xlu2 %930  ;;  %vm947_vm9 = vcmp.eq.s32.totalorder %v2097_v52, %v937_v47 }
  0xec   : > { %v884_v23 = vmax.f32 %v874_v33, 1e-06  ;;  %v903_v28 = vadd.f32 %v893_v50, %v2111_v40  ;;  %vm945_vm7 = vcmp.eq.s32.totalorder %v2097_v52, %v931_v27  ;;  %v436_v50 = vmul.f32 %v1899_v45, %v1815_v2 }
  0xed   : > { %969 = vmax.xlane.f32.xlu2 %v968_v48  ;;  %v2292_v48 = vsub.f32 %v364_v55, %v1875_v26 }
  0xee   : > { %v894_v56 = vmul.f32 %v884_v23, %v2036_v35  ;;  %v2276_v10 = vsel %vm945_vm7, -inf, %v903_v28  ;;  %v435_v23 = vmul.f32 %v1910_v51, %v1839_v11  ;;  %v439_v11 = vmul.f32 %v1906_v49, %v1830_v8 }
  0xef   : > { %v740_v31 = vpop.f32.mrf.mxu3  ;;  %v980_v33 = vsel %vm958_vm2, %v2276_v10, -inf }
  0xf0   : > { %v865_v57 = vmul.f32 %v2041_v38, %v740_v31  ;;  %v934_v38 = vpop.permute.xlu1 %933  ;;  %v904_v29 = vadd.f32 %v894_v56, %v2111_v40  ;;  %v438_v31 = vmul.f32 %v1924_v58, %v1812_v1 }
  0xf1   : > { %vm946_vm8 = vcmp.eq.s32.totalorder %v2097_v52, %v934_v38  ;;  %v473_v52 = vmul.f32 %v2292_v48, %v2292_v48 }
  0xf2   : > { %490 = vadd.xlane.f32.xlu0 %v472_v22  ;;  %v875_v16 = vmul.f32 %v865_v57, %v852_v4  ;;  %v2280_v22 = vsel %vm946_vm8, -inf, %v904_v29 }
  0xf3   : > { %486 = vadd.xlane.f32.xlu1 %v470_v13  ;;  %v983_v5 = vsel %vm958_vm2, %v2280_v22, -inf }
  0xf4   : > { %v885_v32 = vmax.f32 %v875_v16, 1e-06 }
  0xf5   : > { %975 = vmax.xlane.f32.xlu2 %v974_v44 }
  0xf6   : > { %v895_v46 = vmul.f32 %v885_v32, %v2036_v35 }
  0xf8   : > { %v905_v60 = vadd.f32 %v895_v46, %v2111_v40 }
  0xfa   : > { %v2283_v19 = vsel %vm947_vm9, -inf, %v905_v60 }
  0xfb   : > { %v986_v43 = vsel %vm958_vm2, %v2283_v19, -inf  ;;  %981 = vmax.xlane.f32.xlu1 %v980_v33 }
  0xfc   : > { %987 = vmax.xlane.f32.xlu0 %v986_v43 }
  0xfd   : > { %984 = vmax.xlane.f32.xlu2 %v983_v5 }
 0x103   : > { %492 = vadd.xlane.f32.xlu1 %v473_v52 }
 0x104   : > { %446 = vadd.xlane.f32.xlu0 %v435_v23 }
 0x105   : > { %444 = vadd.xlane.f32.xlu2 %v434_v61 }
 0x10b   : > { %450 = vadd.xlane.f32.xlu1 %v437_v54 }
 0x10c   : > { %452 = vadd.xlane.f32.xlu0 %v438_v31 }
 0x10d   : > { %448 = vadd.xlane.f32.xlu2 %v436_v50  ;;  %v2308_v3 = vpop.xlane.xlu0 %478 }
 0x115   : > { %454 = vadd.xlane.f32.xlu2 %v439_v11  ;;  %v2314_v9 = vpop.xlane.xlu0 %484 }
 0x117   : > { %v2310_v51 = vpop.xlane.xlu2 %476 }
 0x119   : > { %v2312_v53 = vpop.xlane.xlu1 %474 }
 0x11f   : > { %v2316_v59 = vpop.xlane.xlu2 %482 }
 0x121   : > { %v2318_v1 = vpop.xlane.xlu1 %480 }
 0x150   : > { %v2320_v2 = vpop.xlane.xlu2 %960 }
 0x151   : > { %v2322_v45 = vpop.xlane.xlu0 %966  ;;  %v989_v8 = vsub.f32 %v2163_v25, %v2320_v2 }
 0x152   : > { %v991_v49 = vsub.f32 %v2165_v15, %v2322_v45 }
 0x153   : > { %v999_v58 = vmul.f32 1.442695, %v989_v8 }
 0x154   : > { %v1003_v57 = vmul.f32 1.442695, %v991_v49 }
 0x155   : > { %1464 = vpow2.f32 %v999_v58 }
 0x156   : > { %1466 = vpow2.f32 %v1003_v57  ;;  %v2328_v13 = vpop.xlane.xlu1 %972 }
 0x157   : > { %v993_v56 = vsub.f32 %v2201_v34, %v2328_v13 }
 0x158   : > { %v2332_v4 = vpop.xlane.xlu2 %488 }
 0x159   : > { %v1007_v25 = vmul.f32 1.442695, %v993_v56  ;;  %v441_v56 = vmul.f32 %v2159_v41, %v1854_v18 }
 0x15b   : > { %v1465_v32 = vpop.eup %1464  ;;  %1468 = vpow2.f32 %v1007_v25 }
 0x15c   : > { %v1467_v15 = vpop.eup %1466  ;;  %v1019_v28 = vsel %vm958_vm2, %v1465_v32, 0.0 }
 0x15d   : > { %v2334_v16 = vpop.xlane.xlu0 %978  ;;  %1020 = vadd.xlane.f32.xlu2 %v1019_v28  ;;  %v1025_v38 = vsel %vm958_vm2, %v1467_v15, 0.0 }
 0x15e   : > { %v995_v27 = vsub.f32 %v2209_v12, %v2334_v16  ;;  %1026 = vadd.xlane.f32.xlu1 %v1025_v38  ;;  %v2340_v34 = vpop.xlane.xlu1 %963 }
 0x15f   : > { %v990_v29 = vsub.f32 %v2241_v37, %v2340_v34 }
 0x160   : > { %v1011_v44 = vmul.f32 1.442695, %v995_v27  ;;  %v2344_v47 = vpop.xlane.xlu2 %969 }
 0x161   : > { %v992_v12 = vsub.f32 %v2244_v36, %v2344_v47  ;;  %v1469_v46 = vpop.eup %1468  ;;  %v1001_v60 = vmul.f32 1.442695, %v990_v29  ;;  %v442_v29 = vmul.f32 %v2226_v42, %v1851_v17  ;;  %v495_v17 = vmul.f32 %v2310_v51, %v1948_v7 }
 0x162   : > { %1470 = vpow2.f32 %v1011_v44  ;;  %v1031_v33 = vsel %vm958_vm2, %v1469_v46, 0.0  ;;  %v440_v44 = vmul.f32 %v2255_v24, %v1860_v20  ;;  %v443_v24 = vmul.f32 %v2292_v48, %v1875_v26 }
 0x163   : > { %v1005_v55 = vmul.f32 1.442695, %v992_v12  ;;  %1472 = vpow2.f32 %v1001_v60  ;;  %1032 = vadd.xlane.f32.xlu0 %v1031_v33  ;;  %v494_v12 = vmul.f32 %v2312_v53, %v1935_v63  ;;  %v496_v46 = vmul.f32 %v2308_v3, %v1933_v62 }
 0x164   : > { %v498_v33 = vmul.f32 %v2316_v59, %v1937_v0  ;;  %v497_v62 = vmul.f32 %v2318_v1, %v1945_v6  ;;  %v2397_v53 = vmax.f32 %v495_v17, 1e-30  ;;  %v499_v0 = vmul.f32 %v2314_v9, %v1961_v14 }
 0x165   : > { %1474 = vpow2.f32 %v1005_v55  ;;  %v2350_v52 = vpop.xlane.xlu0 %490  ;;  %v504_v60 = vmax.f32 %v494_v12, 1e-30  ;;  %v506_v55 = vmax.f32 %v496_v46, 1e-30 }
 0x166   : > { %v2352_v37 = vpop.xlane.xlu1 %486  ;;  %vm530_vm4 = vweird.f32 %v2397_v53 }
 0x167   : > { %v500_v14 = vmul.f32 %v2352_v37, %v1972_v21  ;;  %vm520_vm11 = vweird.f32 %v504_v60  ;;  %vm540_vm13 = vweird.f32 %v506_v55 }
 0x168   : > { %v1471_v43 = vpop.eup %1470  ;;  %v2354_v23 = vpop.xlane.xlu2 %975 }
 0x169   : > { %v1037_v5 = vsel %vm958_vm2, %v1471_v43, 0.0  ;;  %v994_v36 = vsub.f32 %v2267_v39, %v2354_v23  ;;  %v1473_v61 = vpop.eup %1472  ;;  %v2390_v43 = vmax.f32 %v498_v33, 1e-30  ;;  %v2742_v33 = vld [vmem:[#allocation11_spill] sm:$0xff] }
 0x16a   : > { %1038 = vadd.xlane.f32.xlu1 %v1037_v5  ;;  %v1022_v50 = vsel %vm958_vm2, %v1473_v61, 0.0 }
 0x16b   : > { %v1475_v54 = vpop.eup %1474  ;;  %v1009_v31 = vmul.f32 1.442695, %v994_v36  ;;  %1023 = vadd.xlane.f32.xlu0 %v1022_v50  ;;  %v2403_v36 = vmax.f32 %v497_v62, 1e-30  ;;  %vm560_vm0 = vweird.f32 %v2390_v43 }
 0x16c   : > { %v1028_v11 = vsel %vm958_vm2, %v1475_v54, 0.0  ;;  %v2406_v54 = vmax.f32 %v499_v0, 1e-30 }
 0x16d   : > { %1476 = vpow2.f32 %v1009_v31  ;;  %vm550_vm8 = vweird.f32 %v2403_v36 }
 0x16e   : > { %v2360_v8 = vpop.xlane.xlu1 %981  ;;  %vm570_vm5 = vweird.f32 %v2406_v54 }
 0x16f   : > { %v2362_v49 = vpop.xlane.xlu0 %987  ;;  %v996_v58 = vsub.f32 %v2276_v10, %v2360_v8 }
 0x170   : > { %v998_v39 = vsub.f32 %v2283_v19, %v2362_v49  ;;  %v2368_v57 = vpop.xlane.xlu2 %984 }
 0x171   : > { %v997_v27 = vsub.f32 %v2280_v22, %v2368_v57  ;;  %v1013_v25 = vmul.f32 1.442695, %v996_v58 }
 0x172   : > { %1029 = vadd.xlane.f32.xlu1 %v1028_v11  ;;  %v1017_v32 = vmul.f32 1.442695, %v998_v39  ;;  %v501_v11 = vmul.f32 %v2332_v4, %v1990_v30 }
 0x173   : > { %v1477_v15 = vpop.eup %1476  ;;  %v1015_v28 = vmul.f32 1.442695, %v997_v27  ;;  %1478 = vpow2.f32 %v1013_v25  ;;  %458 = vadd.xlane.f32.xlu0 %v441_v56  ;;  %v2421_v56 = vmax.f32 %v500_v14, 1e-30 }
 0x174   : > { %v1034_v10 = vsel %vm958_vm2, %v1477_v15, 0.0  ;;  %1480 = vpow2.f32 %v1017_v32 }
 0x175   : > { %1035 = vadd.xlane.f32.xlu2 %v1034_v10  ;;  %1482 = vpow2.f32 %v1015_v28 }
 0x176   : > { %1484 = vrsqrt.f32 %v504_v60  ;;  %v493_v51 = vpop.xlane.xlu1 %492 }
 0x177   : > { %1486 = vrsqrt.f32 %v506_v55  ;;  %v2419_v58 = vpop.xlane.xlu0 %446 }
 0x178   : > { %v445_v26 = vpop.xlane.xlu2 %444  ;;  %1488 = vrsqrt.f32 %v2390_v43 }
 0x179   : > { %v1479_v19 = vpop.eup %1478  ;;  %1490 = vrsqrt.f32 %v2397_v53 }
 0x17a   : > { %456 = vadd.xlane.f32.xlu1 %v440_v44  ;;  %v1481_v18 = vpop.eup %1480  ;;  %v1040_v41 = vsel %vm958_vm2, %v1479_v19, 0.0  ;;  %1492 = vrsqrt.f32 %v2403_v36  ;;  %v2429_v44 = vmax.f32 %v501_v11, 1e-30 }
 0x17b   : > { %v1483_v22 = vpop.eup %1482  ;;  %1041 = vadd.xlane.f32.xlu0 %v1040_v41  ;;  %v1046_v20 = vsel %vm958_vm2, %v1481_v18, 0.0  ;;  %1494 = vrsqrt.f32 %v2406_v54 }
 0x17c   : > { %v1043_v38 = vsel %vm958_vm2, %v1483_v22, 0.0  ;;  %v1485_v48 = vpop.eup %1484  ;;  %1496 = vrsqrt.f32 %v2421_v56 }
 0x17d   : > { %1044 = vadd.xlane.f32.xlu2 %v1043_v38  ;;  %v1487_v42 = vpop.eup %1486  ;;  %v515_v63 = vmul.f32 %v1485_v48, %v504_v60  ;;  %vm521_vm2 = vweird.f32 %v1485_v48  ;;  %1498 = vrsqrt.f32 %v2429_v44  ;;  %v503_v60 = vmul.f32 %v493_v51, %v2742_v33 }
 0x17e   : > { %v535_v3 = vmul.f32 %v1487_v42, %v506_v55  ;;  %v2401_v59 = vpop.eup %1488  ;;  %v2431_v28 = vpop.xlane.xlu1 %450  ;;  %vm541_vm10 = vweird.f32 %v1487_v42  ;;  %vm522_vm12 = vmor %vm520_vm11, %vm521_vm2 }
 0x17f   : > { %v516_v5 = vmul.f32 %v1485_v48, %v515_v63  ;;  %v555_v6 = vmul.f32 %v2401_v59, %v2390_v43  ;;  %v2413_v9 = vpop.eup %1490  ;;  %vm542_vm14 = vmor %vm540_vm13, %vm541_vm10  ;;  %v453_v17 = vpop.xlane.xlu0 %452  ;;  %vm561_vm15 = vweird.f32 %v2401_v59  ;;  %vm580_vm13 = vweird.f32 %v2421_v56 }
 0x180   : > { %v536_v61 = vmul.f32 %v1487_v42, %v535_v3  ;;  %v449_v7 = vpop.xlane.xlu2 %448  ;;  %v2423_v25 = vpop.eup %1492  ;;  %v525_v21 = vmul.f32 %v2413_v9, %v2397_v53  ;;  %vm562_vm1 = vmor %vm560_vm0, %vm561_vm15  ;;  %vm531_vm3 = vweird.f32 %v2413_v9  ;;  %vm590_vm15 = vweird.f32 %v2429_v44 }
 0x181   : > { %v517_v1 = vmul.f32 0.5, %v516_v5  ;;  %v556_v50 = vmul.f32 %v2401_v59, %v555_v6  ;;  %v2433_v30 = vpop.eup %1494  ;;  %v545_v4 = vmul.f32 %v2423_v25, %v2403_v36  ;;  %vm551_vm6 = vweird.f32 %v2423_v25  ;;  %vm532_vm7 = vmor %vm530_vm4, %vm531_vm3 }
 0x182   : > { %1047 = vadd.xlane.f32.xlu1 %v1046_v20  ;;  %v537_v31 = vmul.f32 0.5, %v536_v61  ;;  %v526_v19 = vmul.f32 %v2413_v9, %v525_v21  ;;  %v565_v41 = vmul.f32 %v2433_v30, %v2406_v54  ;;  %v2741_v20 = vld [vmem:[#allocation10_spill] sm:$0xff]  ;;  %v2446_v55 = vpop.eup %1496  ;;  %vm2498_vm9 = vmor %vm550_vm8, %vm551_vm6  ;;  %vm571_vm2 = vweird.f32 %v2433_v30 }
 0x183   : > { %462 = vadd.xlane.f32.xlu0 %v443_v24  ;;  %v518_v39 = vsub.f32 1.5, %v517_v1  ;;  %v557_v37 = vmul.f32 0.5, %v556_v50  ;;  %v546_v38 = vmul.f32 %v2423_v25, %v545_v4  ;;  %v502_v24 = vmul.f32 %v2350_v52, %v2741_v20  ;;  %v2454_v5 = vpop.eup %1498  ;;  %vm2526_vm10 = vmor %vm570_vm5, %vm571_vm2 }
 0x184   : > { %v538_v27 = vsub.f32 1.5, %v537_v31  ;;  %v527_v46 = vmul.f32 0.5, %v526_v19  ;;  %v566_v3 = vmul.f32 %v2433_v30, %v565_v41  ;;  %v575_v61 = vmul.f32 %v2446_v55, %v2421_v56 }
 0x185   : > { %460 = vadd.xlane.f32.xlu2 %v442_v29  ;;  %v519_v15 = vmul.f32 %v1485_v48, %v518_v39  ;;  %v558_v18 = vsub.f32 1.5, %v557_v37  ;;  %v585_v14 = vmul.f32 %v2454_v5, %v2429_v44  ;;  %vm581_vm11 = vweird.f32 %v2446_v55 }
 0x186   : > { %v539_v10 = vmul.f32 %v1487_v42, %v538_v27  ;;  %v528_v51 = vsub.f32 1.5, %v527_v46  ;;  %v567_v43 = vmul.f32 0.5, %v566_v3  ;;  %v576_v27 = vmul.f32 %v2446_v55, %v575_v61 }
 0x187   : > { %v523_v22 = vsel %vm522_vm12, %v1485_v48, %v519_v15  ;;  %v559_v62 = vmul.f32 %v2401_v59, %v558_v18  ;;  %vm591_vm12 = vweird.f32 %v2454_v5  ;;  %vm1179_vm8 = vcmask 7168  }
 0x188   : > { %v2427_v32 = vpop.xlane.xlu2 %454  ;;  %v614_v29 = vmul.f32 %v523_v22, %v445_v26  ;;  %v543_v12 = vsel %vm542_vm14, %v1487_v42, %v539_v10  ;;  %v547_v26 = vmul.f32 0.5, %v546_v38  ;;  %v2452_v42 = vmax.f32 %v502_v24, 1e-30  ;;  %vm2548_vm14 = vmor %vm580_vm13, %vm581_vm11 }
 0x189   : > { %v616_v63 = vmul.f32 %v543_v12, %v449_v7  ;;  %v2458_v7 = vmax.f32 %v503_v60, 1e-30  ;;  %v563_v1 = vsel %vm562_vm1, %v2401_v59, %v559_v62  ;;  %v529_v21 = vmul.f32 %v2413_v9, %v528_v51  ;;  %vm2565_vm0 = vmor %vm590_vm15, %vm591_vm12 }
 0x18a   : > { %v624_v0 = vmax.f32 %v614_v29, 1e-06  ;;  %v618_v31 = vmul.f32 %v563_v1, %v453_v17  ;;  %v548_v11 = vsub.f32 1.5, %v547_v26  ;;  %v568_v19 = vsub.f32 1.5, %v567_v43 }
 0x18b   : > { %v626_v6 = vmax.f32 %v616_v63, 1e-06  ;;  %v586_v22 = vmul.f32 %v2454_v5, %v585_v14  ;;  %v577_v24 = vmul.f32 0.5, %v576_v27  ;;  %v533_v29 = vsel %vm532_vm7, %v2413_v9, %v529_v21 }
 0x18c   : > { %v635_v50 = vmul.f32 %v2036_v35, %v624_v0  ;;  %v628_v10 = vmax.f32 %v618_v31, 1e-06  ;;  %v549_v53 = vmul.f32 %v2423_v25, %v548_v11  ;;  %v615_v60 = vmul.f32 %v533_v29, %v2419_v58 }
 0x18d   : > { %v637_v59 = vmul.f32 %v2036_v35, %v626_v6  ;;  %v578_v1 = vsub.f32 1.5, %v577_v24  ;;  %vm610_vm4 = vweird.f32 %v2458_v7  ;;  %vm600_vm6 = vweird.f32 %v2452_v42 }
 0x18e   : > { %v2477_v38 = vadd.f32 %v2111_v40, %v635_v50  ;;  %v553_v3 = vsel %vm2498_vm9, %v2423_v25, %v549_v53  ;;  %v625_v31 = vmax.f32 %v615_v60, 1e-06 }
 0x18f   : > { %v2483_v12 = vadd.f32 %v2111_v40, %v637_v59  ;;  %v617_v25 = vmul.f32 %v553_v3, %v2431_v28 }
 0x1d0   : > { %v1021_v48 = vpop.xlane.xlu2 %1020 }
 0x1d1   : > { %1500 = vlog2.f32 %v1021_v48  ;;  %v1027_v52 = vpop.xlane.xlu1 %1026  ;;  %v587_v48 = vmul.f32 0.5, %v586_v22 }
 0x1d2   : > { %1502 = vlog2.f32 %v1027_v52  ;;  %v569_v52 = vmul.f32 %v2433_v30, %v568_v19 }
 0x1d3   : > { %1504 = vrsqrt.f32 %v2452_v42  ;;  %v588_v28 = vsub.f32 1.5, %v587_v48 }
 0x1d4   : > { %1506 = vrsqrt.f32 %v2458_v7  ;;  %v573_v59 = vsel %vm2526_vm10, %v2433_v30, %v569_v52  ;;  %v627_v30 = vmax.f32 %v617_v25, 1e-06 }
 0x1d5   : > { %v619_v22 = vmul.f32 %v573_v59, %v2427_v32  ;;  %v589_v53 = vmul.f32 %v2454_v5, %v588_v28 }
 0x1d6   : > { %v1033_v37 = vpop.xlane.xlu0 %1032 }
 0x1d7   : > { %v1501_v39 = vpop.eup %1500  ;;  %1508 = vlog2.f32 %v1033_v37  ;;  %v629_v52 = vmax.f32 %v619_v22, 1e-06 }
 0x1d8   : > { %v1503_v15 = vpop.eup %1502  ;;  %v1050_v4 = vmul.f32 0.6931472, %v1501_v39 }
 0x1d9   : > { %v1054_v18 = vmul.f32 0.6931472, %v1503_v15  ;;  %v2486_v33 = vpop.eup %1504 }
 0x1da   : > { %v1069_v20 = vadd.f32 %v1050_v4, %v2320_v2  ;;  %v2494_v2 = vpop.eup %1506  ;;  %v595_v0 = vmul.f32 %v2486_v33, %v2452_v42  ;;  %vm601_vm1 = vweird.f32 %v2486_v33 }
 0x1db   : > { %v1071_v46 = vadd.f32 %v1054_v18, %v2322_v45  ;;  %v639_v45 = vmul.f32 %v2036_v35, %v628_v10  ;;  %v605_v43 = vmul.f32 %v2494_v2, %v2458_v7  ;;  %v636_v10 = vmul.f32 %v2036_v35, %v625_v31  ;;  %vm602_vm7 = vmor %vm600_vm6, %vm601_vm1 }
 0x1dc   : > { %v2491_v17 = vmax.f32 %v1069_v20, %v2477_v38  ;;  %v1089_v63 = vmin.f32 %v1069_v20, %v2477_v38  ;;  %v596_v37 = vmul.f32 %v2486_v33, %v595_v0  ;;  %vm611_vm3 = vweird.f32 %v2494_v2 }
 0x1dd   : > { %v1039_v41 = vpop.xlane.xlu1 %1038  ;;  %v2505_v58 = vmax.f32 %v1071_v46, %v2483_v12  ;;  %v1091_v36 = vmin.f32 %v1071_v46, %v2483_v12  ;;  %v1509_v62 = vpop.eup %1508  ;;  %v2520_v50 = vadd.f32 %v2111_v40, %v639_v45  ;;  %v606_v4 = vmul.f32 %v2494_v2, %v605_v43  ;;  %vm612_vm5 = vmor %vm610_vm4, %vm611_vm3 }
 0x1de   : > { %v1099_v26 = vsub.f32 %v1089_v63, %v2491_v17  ;;  %v1058_v51 = vmul.f32 0.6931472, %v1509_v62  ;;  %v1024_v6 = vpop.xlane.xlu0 %1023  ;;  %v2552_v60 = vmul.f32 0.5, %v596_v37  ;;  %v2559_v56 = vadd.f32 %v2111_v40, %v636_v10 }
 0x1df   : > { %v1101_v61 = vsub.f32 %v1091_v36, %v2505_v58  ;;  %1510 = vlog2.f32 %v1024_v6  ;;  %v607_v63 = vmul.f32 0.5, %v606_v4  ;;  %v638_v36 = vmul.f32 %v2036_v35, %v627_v30 }
 0x1e0   : > { %v1109_v14 = vmul.f32 1.442695, %v1099_v26  ;;  %v1073_v27 = vadd.f32 %v1058_v51, %v2328_v13  ;;  %v579_v13 = vmul.f32 %v2446_v55, %v578_v1 }
 0x1e1   : > { %v1113_v39 = vmul.f32 1.442695, %v1101_v61  ;;  %v608_v31 = vsub.f32 1.5, %v607_v63  ;;  %v2578_v25 = vadd.f32 %v2111_v40, %v638_v36 }
 0x1e2   : > { %1512 = vpow2.f32 %v1109_v14  ;;  %v2536_v15 = vmax.f32 %v1073_v27, %v2520_v50  ;;  %v1093_v54 = vmin.f32 %v1073_v27, %v2520_v50  ;;  %v583_v9 = vsel %vm2548_vm14, %v2446_v55, %v579_v13 }
 0x1e3   : > { %1514 = vlog2.f32 %v1039_v41  ;;  %v593_v55 = vsel %vm2565_vm0, %v2454_v5, %v589_v53  ;;  %v598_v14 = vsub.f32 1.5, %v2552_v60  ;;  %v640_v27 = vmul.f32 %v2036_v35, %v629_v52 }
 0x1e4   : > { %v1103_v19 = vsub.f32 %v1093_v54, %v2536_v15 }
 0x1e5   : > { %v1030_v21 = vpop.xlane.xlu1 %1029  ;;  %v1511_v18 = vpop.eup %1510 }
 0x1e6   : > { %1516 = vlog2.f32 %v1030_v21  ;;  %v1117_v41 = vmul.f32 1.442695, %v1103_v19  ;;  %v1052_v20 = vmul.f32 0.6931472, %v1511_v18  ;;  %v459_v24 = vpop.xlane.xlu0 %458  ;;  %v609_v19 = vmul.f32 %v2494_v2, %v608_v31 }
 0x1e7   : > { %1518 = vpow2.f32 %v1113_v39  ;;  %v621_v39 = vmul.f32 %v593_v55, %v459_v24  ;;  %v2597_v24 = vadd.f32 %v2111_v40, %v640_v27 }
 0x1e8   : > { %v1513_v46 = vpop.eup %1512  ;;  %v1036_v32 = vpop.xlane.xlu2 %1035  ;;  %1520 = vpow2.f32 %v1117_v41  ;;  %v1070_v62 = vadd.f32 %v1052_v20, %v2340_v34  ;;  %v613_v55 = vsel %vm612_vm5, %v2494_v2, %v609_v19 }
 0x1e9   : > { %v1515_v45 = vpop.eup %1514  ;;  %1522 = vlog2.f32 %v1036_v32  ;;  %v1129_v61 = vadd.f32 1.0, %v1513_v46  ;;  %v631_v22 = vmax.f32 %v621_v39, 1e-06 }
 0x1ea   : > { %v2573_v51 = vmax.f32 %v1070_v62, %v2559_v56  ;;  %v1090_v34 = vmin.f32 %v1070_v62, %v2559_v56  ;;  %v1062_v1 = vmul.f32 0.6931472, %v1515_v45 }
 0x1eb   : > { %1524 = vlog2.f32 %v1129_v61  ;;  %v642_v36 = vmul.f32 %v2036_v35, %v631_v22 }
 0x1ec   : > { %v1517_v3 = vpop.eup %1516  ;;  %v1100_v5 = vsub.f32 %v1090_v34, %v2573_v51  ;;  %v1075_v10 = vadd.f32 %v1062_v1, %v2334_v16 }
 0x1ed   : > { %v457_v44 = vpop.xlane.xlu1 %456  ;;  %v1519_v0 = vpop.eup %1518  ;;  %v1056_v6 = vmul.f32 0.6931472, %v1517_v3  ;;  %v2620_v1 = vadd.f32 %v2111_v40, %v642_v36 }
 0x1ee   : > { %v620_v26 = vmul.f32 %v583_v9, %v457_v44  ;;  %v1131_v21 = vadd.f32 1.0, %v1519_v0  ;;  %v1521_v28 = vpop.eup %1520  ;;  %v1111_v37 = vmul.f32 1.442695, %v1100_v5  ;;  %v1042_v13 = vpop.xlane.xlu0 %1041  ;;  %v599_v9 = vmul.f32 %v2486_v33, %v598_v14 }
 0x1ef   : > { %v1072_v11 = vadd.f32 %v1056_v6, %v2344_v47  ;;  %v1523_v47 = vpop.eup %1522  ;;  %1526 = vlog2.f32 %v1042_v13  ;;  %v1133_v46 = vadd.f32 1.0, %v1521_v28 }
 0x1f0   : > { %v630_v43 = vmax.f32 %v620_v26, 1e-06  ;;  %1528 = vpow2.f32 %v1111_v37  ;;  %v1060_v53 = vmul.f32 0.6931472, %v1523_v47  ;;  %v1045_v41 = vpop.xlane.xlu2 %1044  ;;  %v603_v14 = vsel %vm602_vm7, %v2486_v33, %v599_v9 }
 0x1f1   : > { %v2587_v54 = vmax.f32 %v1072_v11, %v2578_v25  ;;  %v1092_v4 = vmin.f32 %v1072_v11, %v2578_v25  ;;  %1530 = vlog2.f32 %v1131_v21  ;;  %v1525_v45 = vpop.eup %1524 }
 0x1f2   : > { %v641_v59 = vmul.f32 %v2036_v35, %v630_v43  ;;  %v1074_v63 = vadd.f32 %v1060_v53, %v2354_v23  ;;  %1532 = vlog2.f32 %v1045_v41  ;;  %v1140_v27 = vmul.f32 0.6931472, %v1525_v45 }
 0x1f3   : > { %v1102_v18 = vsub.f32 %v1092_v4, %v2587_v54 }
 0x1f4   : > { %v2592_v30 = vadd.f32 %v2111_v40, %v641_v59  ;;  %v2609_v62 = vmax.f32 %v1074_v63, %v2597_v24  ;;  %v1094_v48 = vmin.f32 %v1074_v63, %v2597_v24  ;;  %v1159_v53 = vadd.f32 %v1140_v27, %v2491_v17 }
 0x1f5   : > { %v1048_v20 = vpop.xlane.xlu1 %1047  ;;  %v1115_v60 = vmul.f32 1.442695, %v1102_v18  ;;  %v1527_v44 = vpop.eup %1526 }
 0x1f6   : > { %v2600_v29 = vmax.f32 %v1075_v10, %v2592_v30  ;;  %v1095_v16 = vmin.f32 %v1075_v10, %v2592_v30  ;;  %1534 = vlog2.f32 %v1048_v20  ;;  %v1529_v23 = vpop.eup %1528  ;;  %v1104_v7 = vsub.f32 %v1094_v48, %v2609_v62  ;;  %v463_v26 = vpop.xlane.xlu0 %462 }
 0x1f7   : > { %1536 = vpow2.f32 %v1115_v60  ;;  %v1064_v52 = vmul.f32 0.6931472, %v1527_v44  ;;  %v1531_v0 = vpop.eup %1530  ;;  %v1130_v61 = vadd.f32 1.0, %v1529_v23  ;;  %v623_v34 = vmul.f32 %v613_v55, %v463_v26 }
 0x1f8   : > { %v1105_v32 = vsub.f32 %v1095_v16, %v2600_v29  ;;  %1538 = vlog2.f32 %v1133_v46  ;;  %v1533_v6 = vpop.eup %1532  ;;  %v1119_v42 = vmul.f32 1.442695, %v1104_v7  ;;  %v461_v31 = vpop.xlane.xlu2 %460  ;;  %v1144_v28 = vmul.f32 0.6931472, %v1531_v0 }
 0x1f9   : > { %v1076_v43 = vadd.f32 %v1064_v52, %v2360_v8  ;;  %v633_v2 = vmax.f32 %v623_v34, 1e-06  ;;  %v622_v11 = vmul.f32 %v603_v14, %v461_v31  ;;  %v1066_v47 = vmul.f32 0.6931472, %v1533_v6 }
 0x1fa   : > { %v1121_v3 = vmul.f32 1.442695, %v1105_v32  ;;  %v1161_v60 = vadd.f32 %v1144_v28, %v2505_v58  ;;  %v1169_v58 = vsub.f32 %v1159_v53, %v2477_v38 }
 0x1fb   : > { %v2625_v21 = vmax.f32 %v1076_v43, %v2620_v1  ;;  %v1096_v59 = vmin.f32 %v1076_v43, %v2620_v1  ;;  %v644_v8 = vmul.f32 %v2036_v35, %v633_v2  ;;  %v632_v10 = vmax.f32 %v622_v11, 1e-06 }
 0x1fc   : > { %1540 = vpow2.f32 %v1121_v3  ;;  %v1535_v5 = vpop.eup %1534  ;;  %v1077_v36 = vadd.f32 %v1066_v47, %v2368_v57  ;;  %v1171_v52 = vsub.f32 %v1161_v60, %v2483_v12 }
 0x1fd   : > { %1542 = vlog2.f32 %v1130_v61  ;;  %v1537_v39 = vpop.eup %1536  ;;  %v1068_v4 = vmul.f32 0.6931472, %v1535_v5  ;;  %v1106_v33 = vsub.f32 %v1096_v59, %v2625_v21  ;;  %v2632_v22 = vadd.f32 %v2111_v40, %v644_v8 }
 0x1fe   : > { %1544 = vpow2.f32 %v1119_v42  ;;  %v1132_v37 = vadd.f32 1.0, %v1537_v39  ;;  %v1539_v13 = vpop.eup %1538  ;;  %v643_v16 = vmul.f32 %v2036_v35, %v632_v10  ;;  %v1183_v12 = vsel %vm1179_vm8, %v1171_v52, 0.0 }
 0x1ff   : > { %v1078_v18 = vadd.f32 %v1068_v4, %v2362_v49  ;;  %v1123_v20 = vmul.f32 1.442695, %v1106_v33  ;;  %v1148_v63 = vmul.f32 0.6931472, %v1539_v13 }
 0x200   : > { %1546 = vlog2.f32 %v1132_v37  ;;  %v2643_v17 = vadd.f32 %v2111_v40, %v643_v16 }
 0x201   : > { %v1098_v32 = vmin.f32 %v1078_v18, %v2632_v22  ;;  %v2639_v9 = vmax.f32 %v1078_v18, %v2632_v22  ;;  %v1163_v40 = vadd.f32 %v1148_v63, %v2536_v15 }
 0x202   : > { %v1541_v19 = vpop.eup %1540  ;;  %v1087_v3 = vmax.f32 %v1077_v36, %v2643_v17  ;;  %v1097_v23 = vmin.f32 %v1077_v36, %v2643_v17 }
 0x203   : > { %v1135_v41 = vadd.f32 1.0, %v1541_v19  ;;  %v1543_v46 = vpop.eup %1542  ;;  %v1108_v35 = vsub.f32 %v1098_v32, %v2639_v9  ;;  %v1173_v15 = vsub.f32 %v1163_v40, %v2520_v50 }
 0x204   : > { %v1545_v45 = vpop.eup %1544  ;;  %v1142_v49 = vmul.f32 0.6931472, %v1543_v46  ;;  %v1107_v0 = vsub.f32 %v1097_v23, %v1087_v3 }
 0x205   : > { %1548 = vlog2.f32 %v1135_v41  ;;  %v1134_v48 = vadd.f32 1.0, %v1545_v45  ;;  %v1127_v57 = vmul.f32 1.442695, %v1108_v35  ;;  %v1187_v28 = vsel %vm1179_vm8, %v1173_v15, 0.0 }
 0x206   : > { %1550 = vpow2.f32 %v1123_v20  ;;  %v1160_v44 = vadd.f32 %v1142_v49, %v2573_v51  ;;  %v1547_v7 = vpop.eup %1546  ;;  %v1180_v51 = vsel %vm1179_vm8, %v1169_v58, 0.0  ;;  %v1125_v6 = vmul.f32 1.442695, %v1107_v0 }
 0x207   : > { %1552 = vlog2.f32 %v1134_v48  ;;  %v1146_v26 = vmul.f32 0.6931472, %v1547_v7 }
 0x208   : > { %v1170_v55 = vsub.f32 %v1160_v44, %v2559_v56  ;;  %1554 = vpow2.f32 %v1127_v57 }
 0x209   : > { %v1162_v34 = vadd.f32 %v1146_v26, %v2587_v54  ;;  %1556 = vpow2.f32 %v1125_v6 }
 0x20a   : > { %v1181_v61 = vsel %vm1179_vm8, %v1170_v55, 0.0 }
 0x20b   : > { %v1549_v38 = vpop.eup %1548  ;;  %v1182_v43 = vadd.f32 %v1181_v61, %v1180_v51  ;;  %v1172_v56 = vsub.f32 %v1162_v34, %v2578_v25 }
 0x20c   : > { %v1551_v42 = vpop.eup %1550  ;;  %v1152_v31 = vmul.f32 0.6931472, %v1549_v38 }
 0x20d   : > { %v1136_v14 = vadd.f32 1.0, %v1551_v42  ;;  %v1553_v5 = vpop.eup %1552  ;;  %v1184_v2 = vadd.f32 %v1183_v12, %v1182_v43  ;;  %v1185_v11 = vsel %vm1179_vm8, %v1172_v56, 0.0 }
 0x20e   : > { %v1150_v39 = vmul.f32 0.6931472, %v1553_v5  ;;  %v1165_v27 = vadd.f32 %v1152_v31, %v2600_v29  ;;  %v1555_v54 = vpop.eup %1554 }
 0x20f   : > { %1558 = vlog2.f32 %v1136_v14  ;;  %v1186_v59 = vadd.f32 %v1185_v11, %v1184_v2  ;;  %v1138_v4 = vadd.f32 1.0, %v1555_v54  ;;  %v1557_v8 = vpop.eup %1556 }
 0x210   : > { %v1164_v37 = vadd.f32 %v1150_v39, %v2609_v62  ;;  %v1175_v13 = vsub.f32 %v1165_v27, %v2592_v30  ;;  %v1137_v33 = vadd.f32 1.0, %v1557_v8 }
 0x211   : > { %v1188_v50 = vadd.f32 %v1187_v28, %v1186_v59  ;;  %1560 = vlog2.f32 %v1138_v4 }
 0x212   : > { %v1174_v25 = vsub.f32 %v1164_v37, %v2597_v24  ;;  %1562 = vlog2.f32 %v1137_v33  ;;  %v1191_v18 = vsel %vm1179_vm8, %v1175_v13, 0.0 }
 0x214   : > { %v1189_v10 = vsel %vm1179_vm8, %v1174_v25, 0.0 }
 0x215   : > { %v1559_v47 = vpop.eup %1558  ;;  %v1190_v19 = vadd.f32 %v1189_v10, %v1188_v50 }
 0x216   : > { %v1154_v29 = vmul.f32 0.6931472, %v1559_v47 }
 0x217   : > { %v1192_v62 = vadd.f32 %v1191_v18, %v1190_v19  ;;  %v1561_v41 = vpop.eup %1560 }
 0x218   : > { %v1166_v53 = vadd.f32 %v1154_v29, %v2625_v21  ;;  %v1158_v20 = vmul.f32 0.6931472, %v1561_v41  ;;  %v1563_v24 = vpop.eup %1562 }
 0x219   : > { %v1156_v46 = vmul.f32 0.6931472, %v1563_v24 }
 0x21a   : > { %v1176_v16 = vsub.f32 %v1166_v53, %v2620_v1  ;;  %v1168_v60 = vadd.f32 %v1158_v20, %v2639_v9 }
 0x21b   : > { %v1167_v32 = vadd.f32 %v1156_v46, %v1087_v3 }
 0x21c   : > { %v1193_v30 = vsel %vm1179_vm8, %v1176_v16, 0.0  ;;  %v1178_v49 = vsub.f32 %v1168_v60, %v2632_v22 }
 0x21d   : > { %v1194_v63 = vadd.f32 %v1193_v30, %v1192_v62  ;;  %v1177_v45 = vsub.f32 %v1167_v32, %v2643_v17 }
 0x21e   : > { %v1197_v48 = vsel %vm1179_vm8, %v1178_v49, 0.0 }
 0x21f   : > { %v1195_v21 = vsel %vm1179_vm8, %v1177_v45, 0.0 }
 0x220   : > { %v1196_v36 = vadd.f32 %v1195_v21, %v1194_v63 }
 0x222   : > { %v1198_v1 = vadd.f32 %v1197_v48, %v1196_v36 }
 0x224   : > { %1199 = vadd.xlane.f32.xlu1 %v1198_v1 }
 0x297   : > { %v1200_v35 = vpop.xlane.xlu1 %1199 }
 0x298   : > { %v1201_v58 = vrot.slane %v1200_v35, 4 }
 0x29a   : > { %v1202_v44 = vadd.f32 %v1201_v58, %v1200_v35 }
 0x29c   : > { %v1203_v9 = vrot.slane %v1202_v44, 2 }
 0x29e   : > { %v1204_v23 = vadd.f32 %v1203_v9, %v1202_v44 }
 0x2a0   : > { %v1205_v3 = vrot.slane %v1204_v23, 1 }
 0x2a2   : > { %v1206_v7 = vadd.f32 %v1205_v3, %v1204_v23 }
 0x2a4   : > { %1389 = vpush %v1206_v7 }
 0x2d5   : > { %s1390_s19 = spop %1389 }
 0x2d6   : > { %v1208_v22 = vstv %s1390_s19 }
 0x2d7   : > { %1209 = vst [vmem:[%s331_s10] sm:$0x1] %v1208_v22 }
 0x2d8   : > { %1621 = shalt.err (!%p1618_p8)
}
 0x2d9   : > { %1393 = dma.vmem_to_hbm [thread:$0]  (%p1757_p11), %s1222_s11, 16, %s1224_s13, %s1211_s20  }
 0x2da PF: > { %s1235_s21 = sand.u32 1, %s1648_s28   ;;  %p1400_p10 = pnand %p1315_p9, %p1761_p12 }
 0x2db   : > { %s1236_s27 = scalar_lea.sflag [#allocation6], %s1235_s21 }
 0x2dc   : > { %p1401_p0 = pneg %p1400_p10 }
 0x2de   : > { %1643 = dma.done.wait (%p1401_p0), %s1236_s27, 16  }
 0x2df   : > { %1645 = vsyncadd (%p1401_p0), %s1236_s27, 4294967280  ;;  %p22_p1 = scmp.ge.s32.totalorder %s1736_s9, 4   ;;  %s2751_s28 = smov %s1652_s29 }
 0x2e0   : > { %s2752_s29 = smov %s1656_s30  ;;  %s2753_s30 = smov %s1748_s12 }
 0x2e1   : > { %s2754_s8 = smov %s1736_s9  ;;  %24 = sbr.rel (!%p22_p1) target bundleno = 8 (0x8), region = 99 }
 0x2e6   :  { %1241 = vsyncpa [#allocation5], 1 }
 0x2e7   :  { %1243 = vsyncpa [#allocation5 + $0x1], 1 }
 0x2e8   :  { %1244 = vsyncpa [#allocation6], 1 }
 0x2e9   :  { %1246 = vsyncpa [#allocation6 + $0x1], 1 }

</bundles_post_ra>
